<compile_context>
chip_gen: v7x
topology: tpu7x:2x2x1
jax: 0.10.0
libtpu: 0.0.40
codegen_flags: <defaults>
</compile_context>

<pallas_src>
import functools

import jax
import jax.numpy as jnp
from jax.experimental import pallas as pl
from jax.experimental.pallas import tpu as pltpu


def _round_up(x, m):
    return (x + m - 1) // m * m


def _pick_row_tile(h_out, cap=8):
    """Largest divisor of h_out that is <= cap (keeps the accumulator in vregs)."""
    for th in range(min(h_out, cap), 0, -1):
        if h_out % th == 0:
            return th
    return 1


def _conv_bn_prelu_kernel(x_ref, w_ref, ba_ref, o_ref, lhs_ref, *,
                          kh, kw, sh, sw, th, w_out, cin):
    # x_ref  : (1, Hp, Wp, Cin)        padded input image of this batch element (VMEM)
    # w_ref  : (KH*KW*Cin, Cp)         BN-scale-folded weights, Cout padded to Cp (x128)
    # ba_ref : (2, Cp) f32             row 0 = folded BN bias, row 1 = PReLU alpha
    # o_ref  : (1, TH, Wout, Cp)       lane-dense output block (Cp multiple of 128)
    # lhs_ref: (TH*Wout, KH*KW*Cin)    im2col scratch (compute dtype)
    t = pl.program_id(1)
    row0 = pl.multiple_of(t * (th * sh), th * sh)
    m = th * w_out
    cp = w_ref.shape[-1]

    # Build the im2col LHS in VMEM scratch: one strided window read + narrow scratch
    # store per kernel tap, then a single K = KH*KW*Cin contraction on the MXU.
    for i in range(kh):
        for j in range(kw):
            if sh == 1 and sw == 1:
                win = x_ref[0, pl.ds(row0 + i, th), pl.ds(j, w_out), :]
            else:
                win = x_ref[0, pl.ds(row0 + i, th, stride=sh),
                            pl.ds(j, w_out, stride=sw), :]
            c0 = (i * kw + j) * cin
            lhs_ref[:, c0:c0 + cin] = win.reshape(m, cin)

    acc = jnp.dot(lhs_ref[...], w_ref[...], preferred_element_type=jnp.float32)

    # Fused (folded) BatchNorm bias + per-channel PReLU, all in f32, lane-dense.
    bias = ba_ref[0:1, :]
    alpha = ba_ref[1:2, :]
    y = acc + bias
    y = jnp.where(y >= 0.0, y, alpha * y)
    o_ref[0] = y.reshape(th, w_out, cp).astype(o_ref.dtype)


def conv_block_forward(x_nchw, weight_oihw, bn_gamma, bn_beta, bn_mean, bn_var,
                       prelu_alpha, *, stride=(1, 1), padding=(0, 0), eps=1e-5,
                       compute_dtype=None):
    """Forward pass of Conv_block. Input/weights in PyTorch layouts (NCHW / OIHW)."""
    n, c_in, h, w = x_nchw.shape
    c_out, c_in_w, kh, kw = weight_oihw.shape
    assert c_in == c_in_w, "groups != 1 not supported"
    sh, sw = stride
    ph, pw = padding

    h_out = (h + 2 * ph - kh) // sh + 1
    w_out = (w + 2 * pw - kw) // sw + 1

    out_dtype = x_nchw.dtype
    if compute_dtype is None:
        compute_dtype = x_nchw.dtype

    # ---- layout / folding glue (plain JAX, outside the kernel) ----
    # TODO(synk): keep NHWC end-to-end and fold the halo padding into the kernel's input
    # DMA (masked edge taps) when adjacent ops can consume NHWC; the NCHW transposes and
    # jnp.pad below each cost an extra HBM pass at these small channel counts.
    x_nhwc = jnp.transpose(x_nchw, (0, 2, 3, 1))
    x_pad = jnp.pad(x_nhwc, ((0, 0), (ph, ph), (pw, pw), (0, 0))).astype(compute_dtype)
    hp, wp = x_pad.shape[1], x_pad.shape[2]

    # Fold BN scale directly into the conv weights (exact: conv has no bias), reshape to
    # a single (KH*KW*Cin, Cout) contraction matrix, pad Cout to a lane-dense multiple
    # of 128 (padded columns are zero -> padded output channels are exactly zero).
    f32 = jnp.float32
    scale = bn_gamma.astype(f32) / jnp.sqrt(bn_var.astype(f32) + eps)            # (Cout,)
    bias = bn_beta.astype(f32) - bn_mean.astype(f32) * scale                     # (Cout,)
    w_hwio = jnp.transpose(weight_oihw, (2, 3, 1, 0)).astype(f32) * scale        # (KH,KW,Cin,Cout)

    k_dim = kh * kw * c_in
    cp = _round_up(c_out, 128)
    w2 = jnp.zeros((k_dim, cp), f32).at[:, :c_out].set(w_hwio.reshape(k_dim, c_out))
    w2 = w2.astype(compute_dtype)
    ba = jnp.zeros((2, cp), f32)
    ba = ba.at[0, :c_out].set(bias)
    ba = ba.at[1, :c_out].set(prelu_alpha.astype(f32))

    th = _pick_row_tile(h_out)
    n_t = h_out // th

    kernel = functools.partial(
        _conv_bn_prelu_kernel,
        kh=kh, kw=kw, sh=sh, sw=sw, th=th, w_out=w_out, cin=c_in)

    # TODO(synk): for very large images, replace the whole-image input block with
    # halo'd row-window DMAs (pl.ANY + make_async_copy) to bound VMEM on v7x (64 MiB).
    out_padded = pl.pallas_call(
        kernel,
        out_shape=jax.ShapeDtypeStruct((n, h_out, w_out, cp), out_dtype),
        grid_spec=pltpu.PrefetchScalarGridSpec(
            num_scalar_prefetch=0,
            grid=(n, n_t),
            in_specs=[
                # Whole padded image per batch element; block index ignores t so it is
                # not re-fetched across row tiles. Kernel only reads the rows it needs.
                pl.BlockSpec((1, hp, wp, c_in), lambda b, t: (b, 0, 0, 0)),
                pl.BlockSpec((k_dim, cp), lambda b, t: (0, 0)),
                pl.BlockSpec((2, cp), lambda b, t: (0, 0)),
            ],
            out_specs=pl.BlockSpec((1, th, w_out, cp), lambda b, t: (b, t, 0, 0)),
            scratch_shapes=[pltpu.VMEM((th * w_out, k_dim), compute_dtype)],
        ),
        compiler_params=pltpu.CompilerParams(
            dimension_semantics=("parallel", "parallel"),
            vmem_limit_bytes=32 * 1024 * 1024,
        ),
    )(x_pad, w2, ba)

    out_nhwc = out_padded[..., :c_out]            # drop lane-padding channels
    return jnp.transpose(out_nhwc, (0, 3, 1, 2))  # back to NCHW


def _reference(x_nchw, weight_oihw, bn_gamma, bn_beta, bn_mean, bn_var,
               prelu_alpha, *, stride, padding, eps=1e-5):
    x_nhwc = jnp.transpose(x_nchw, (0, 2, 3, 1))
    w_hwio = jnp.transpose(weight_oihw, (2, 3, 1, 0))
    y = jax.lax.conv_general_dilated(
        x_nhwc, w_hwio, window_strides=stride,
        padding=[(padding[0], padding[0]), (padding[1], padding[1])],
        dimension_numbers=("NHWC", "HWIO", "NHWC"))
    scale = bn_gamma / jnp.sqrt(bn_var + eps)
    y = y * scale + (bn_beta - bn_mean * scale)
    y = jnp.where(y >= 0, y, prelu_alpha * y)
    return jnp.transpose(y, (0, 3, 1, 2))


if __name__ == "__main__":
    # Conv_block(in_c=4, out_c=8, kernel=(3, 3), stride=(1, 1), padding=(1, 1), groups=1)
    key = jax.random.PRNGKey(0)
    k_x, k_w, k_g, k_b, k_m, k_v, k_a = jax.random.split(key, 7)

    N, C_IN, H, W = 2, 4, 16, 16
    C_OUT, KH, KW = 8, 3, 3
    STRIDE, PADDING = (1, 1), (1, 1)

    x = jax.random.normal(k_x, (N, C_IN, H, W), dtype=jnp.float32)
    weight = 0.1 * jax.random.normal(k_w, (C_OUT, C_IN, KH, KW), dtype=jnp.float32)
    bn_gamma = 1.0 + 0.1 * jax.random.normal(k_g, (C_OUT,), dtype=jnp.float32)
    bn_beta = 0.1 * jax.random.normal(k_b, (C_OUT,), dtype=jnp.float32)
    bn_mean = 0.1 * jax.random.normal(k_m, (C_OUT,), dtype=jnp.float32)
    bn_var = jnp.abs(jax.random.normal(k_v, (C_OUT,), dtype=jnp.float32)) + 0.5
    prelu_alpha = jnp.full((C_OUT,), 0.25, dtype=jnp.float32)  # PyTorch PReLU default init

    ref = _reference(x, weight, bn_gamma, bn_beta, bn_mean, bn_var,
                     prelu_alpha, stride=STRIDE, padding=PADDING)

    # f32 operand path (exact check).
    out = conv_block_forward(x, weight, bn_gamma, bn_beta, bn_mean, bn_var,
                             prelu_alpha, stride=STRIDE, padding=PADDING)
    out = jax.block_until_ready(out)
    assert out.shape == (N, C_OUT, H, W)
    assert jnp.allclose(out, ref, atol=1e-4, rtol=1e-4)

    # bf16 operand path (recommended on v6e/v7x): f32 accumulation + f32 epilogue.
    out_bf16 = conv_block_forward(x, weight, bn_gamma, bn_beta, bn_mean, bn_var,
                                  prelu_alpha, stride=STRIDE, padding=PADDING,
                                  compute_dtype=jnp.bfloat16)
    out_bf16 = jax.block_until_ready(out_bf16)
    assert out_bf16.shape == (N, C_OUT, H, W)
    assert jnp.allclose(out_bf16, ref, atol=5e-2, rtol=5e-2)

    print("KERNEL_OK")
</pallas_src>

<mosaic_0001>
module attributes {stable_mosaic.version = 11 : i64} {
  func.func @_conv_bn_prelu_kernel(%arg0: i32, %arg1: i32, %arg2: memref<1x18x18x4xf32, #tpu.memory_space<vmem>>, %arg3: memref<36x128xf32, #tpu.memory_space<vmem>>, %arg4: memref<2x128xf32, #tpu.memory_space<vmem>>, %arg5: memref<1x8x16x128xf32, #tpu.memory_space<vmem>>, %arg6: memref<128x36xf32, #tpu.memory_space<vmem>>) attributes {dimension_semantics = [#tpu.dimension_semantics<parallel>, #tpu.dimension_semantics<parallel>], iteration_bounds = array<i64: 2, 2>, scalar_prefetch = 0 : i64, scratch_operands = 1 : i64, tpu.core_type = #tpu.core_type<tc>, window_params = [{transform_indices = @transform_0, window_bounds = array<i64: 1, 18, 18, 4>}, {pipeline_mode = #tpu.pipeline_mode<synchronous>, transform_indices = @transform_1, window_bounds = array<i64: 36, 128>}, {pipeline_mode = #tpu.pipeline_mode<synchronous>, transform_indices = @transform_2, window_bounds = array<i64: 2, 128>}, {transform_indices = @transform_3, window_bounds = array<i64: 1, 8, 16, 128>}]} {
    %c8_i32 = arith.constant 8 : i32
    %0 = arith.muli %arg1, %c8_i32 : i32
    %1 = tpu.assume_multiple %0, 8 : i32
    %c0_i32 = arith.constant 0 : i32
    %2 = arith.addi %1, %c0_i32 : i32
    %c0 = arith.constant 0 : index
    %3 = arith.index_cast %2 : i32 to index
    %c0_0 = arith.constant 0 : index
    %c0_1 = arith.constant 0 : index
    %4 = vector.load %arg2[%c0, %3, %c0_0, %c0_1] : memref<1x18x18x4xf32, #tpu.memory_space<vmem>>, vector<1x8x16x4xf32>
    %5 = vector.shape_cast %4 : vector<1x8x16x4xf32> to vector<8x16x4xf32>
    %6 = vector.shape_cast %5 : vector<8x16x4xf32> to vector<128x4xf32>
    %c0_2 = arith.constant 0 : index
    %c0_3 = arith.constant 0 : index
    %7 = vector.load %arg6[%c0_2, %c0_3] : memref<128x36xf32, #tpu.memory_space<vmem>>, vector<128x4xf32>
    tpu.vector_store %arg6[%c0_2, %c0_3], %6 {strides = array<i32>} : memref<128x36xf32, #tpu.memory_space<vmem>>, vector<128x4xf32>,
    %c0_i32_4 = arith.constant 0 : i32
    %8 = arith.addi %1, %c0_i32_4 : i32
    %c0_5 = arith.constant 0 : index
    %9 = arith.index_cast %8 : i32 to index
    %c1 = arith.constant 1 : index
    %c0_6 = arith.constant 0 : index
    %10 = vector.load %arg2[%c0_5, %9, %c1, %c0_6] : memref<1x18x18x4xf32, #tpu.memory_space<vmem>>, vector<1x8x16x4xf32>
    %11 = vector.shape_cast %10 : vector<1x8x16x4xf32> to vector<8x16x4xf32>
    %12 = vector.shape_cast %11 : vector<8x16x4xf32> to vector<128x4xf32>
    %c0_7 = arith.constant 0 : index
    %c4 = arith.constant 4 : index
    %13 = vector.load %arg6[%c0_7, %c4] : memref<128x36xf32, #tpu.memory_space<vmem>>, vector<128x4xf32>
    tpu.vector_store %arg6[%c0_7, %c4], %12 {strides = array<i32>} : memref<128x36xf32, #tpu.memory_space<vmem>>, vector<128x4xf32>,
    %c0_i32_8 = arith.constant 0 : i32
    %14 = arith.addi %1, %c0_i32_8 : i32
    %c0_9 = arith.constant 0 : index
    %15 = arith.index_cast %14 : i32 to index
    %c2 = arith.constant 2 : index
    %c0_10 = arith.constant 0 : index
    %16 = vector.load %arg2[%c0_9, %15, %c2, %c0_10] : memref<1x18x18x4xf32, #tpu.memory_space<vmem>>, vector<1x8x16x4xf32>
    %17 = vector.shape_cast %16 : vector<1x8x16x4xf32> to vector<8x16x4xf32>
    %18 = vector.shape_cast %17 : vector<8x16x4xf32> to vector<128x4xf32>
    %c0_11 = arith.constant 0 : index
    %c8 = arith.constant 8 : index
    %19 = vector.load %arg6[%c0_11, %c8] : memref<128x36xf32, #tpu.memory_space<vmem>>, vector<128x4xf32>
    tpu.vector_store %arg6[%c0_11, %c8], %18 {strides = array<i32>} : memref<128x36xf32, #tpu.memory_space<vmem>>, vector<128x4xf32>,
    %c1_i32 = arith.constant 1 : i32
    %20 = arith.addi %1, %c1_i32 : i32
    %c0_12 = arith.constant 0 : index
    %21 = arith.index_cast %20 : i32 to index
    %c0_13 = arith.constant 0 : index
    %c0_14 = arith.constant 0 : index
    %22 = vector.load %arg2[%c0_12, %21, %c0_13, %c0_14] : memref<1x18x18x4xf32, #tpu.memory_space<vmem>>, vector<1x8x16x4xf32>
    %23 = vector.shape_cast %22 : vector<1x8x16x4xf32> to vector<8x16x4xf32>
    %24 = vector.shape_cast %23 : vector<8x16x4xf32> to vector<128x4xf32>
    %c0_15 = arith.constant 0 : index
    %c12 = arith.constant 12 : index
    %25 = vector.load %arg6[%c0_15, %c12] : memref<128x36xf32, #tpu.memory_space<vmem>>, vector<128x4xf32>
    tpu.vector_store %arg6[%c0_15, %c12], %24 {strides = array<i32>} : memref<128x36xf32, #tpu.memory_space<vmem>>, vector<128x4xf32>,
    %c1_i32_16 = arith.constant 1 : i32
    %26 = arith.addi %1, %c1_i32_16 : i32
    %c0_17 = arith.constant 0 : index
    %27 = arith.index_cast %26 : i32 to index
    %c1_18 = arith.constant 1 : index
    %c0_19 = arith.constant 0 : index
    %28 = vector.load %arg2[%c0_17, %27, %c1_18, %c0_19] : memref<1x18x18x4xf32, #tpu.memory_space<vmem>>, vector<1x8x16x4xf32>
    %29 = vector.shape_cast %28 : vector<1x8x16x4xf32> to vector<8x16x4xf32>
    %30 = vector.shape_cast %29 : vector<8x16x4xf32> to vector<128x4xf32>
    %c0_20 = arith.constant 0 : index
    %c16 = arith.constant 16 : index
    %31 = vector.load %arg6[%c0_20, %c16] : memref<128x36xf32, #tpu.memory_space<vmem>>, vector<128x4xf32>
    tpu.vector_store %arg6[%c0_20, %c16], %30 {strides = array<i32>} : memref<128x36xf32, #tpu.memory_space<vmem>>, vector<128x4xf32>,
    %c1_i32_21 = arith.constant 1 : i32
    %32 = arith.addi %1, %c1_i32_21 : i32
    %c0_22 = arith.constant 0 : index
    %33 = arith.index_cast %32 : i32 to index
    %c2_23 = arith.constant 2 : index
    %c0_24 = arith.constant 0 : index
    %34 = vector.load %arg2[%c0_22, %33, %c2_23, %c0_24] : memref<1x18x18x4xf32, #tpu.memory_space<vmem>>, vector<1x8x16x4xf32>
    %35 = vector.shape_cast %34 : vector<1x8x16x4xf32> to vector<8x16x4xf32>
    %36 = vector.shape_cast %35 : vector<8x16x4xf32> to vector<128x4xf32>
    %c0_25 = arith.constant 0 : index
    %c20 = arith.constant 20 : index
    %37 = vector.load %arg6[%c0_25, %c20] : memref<128x36xf32, #tpu.memory_space<vmem>>, vector<128x4xf32>
    tpu.vector_store %arg6[%c0_25, %c20], %36 {strides = array<i32>} : memref<128x36xf32, #tpu.memory_space<vmem>>, vector<128x4xf32>,
    %c2_i32 = arith.constant 2 : i32
    %38 = arith.addi %1, %c2_i32 : i32
    %c0_26 = arith.constant 0 : index
    %39 = arith.index_cast %38 : i32 to index
    %c0_27 = arith.constant 0 : index
    %c0_28 = arith.constant 0 : index
    %40 = vector.load %arg2[%c0_26, %39, %c0_27, %c0_28] : memref<1x18x18x4xf32, #tpu.memory_space<vmem>>, vector<1x8x16x4xf32>
    %41 = vector.shape_cast %40 : vector<1x8x16x4xf32> to vector<8x16x4xf32>
    %42 = vector.shape_cast %41 : vector<8x16x4xf32> to vector<128x4xf32>
    %c0_29 = arith.constant 0 : index
    %c24 = arith.constant 24 : index
    %43 = vector.load %arg6[%c0_29, %c24] : memref<128x36xf32, #tpu.memory_space<vmem>>, vector<128x4xf32>
    tpu.vector_store %arg6[%c0_29, %c24], %42 {strides = array<i32>} : memref<128x36xf32, #tpu.memory_space<vmem>>, vector<128x4xf32>,
    %c2_i32_30 = arith.constant 2 : i32
    %44 = arith.addi %1, %c2_i32_30 : i32
    %c0_31 = arith.constant 0 : index
    %45 = arith.index_cast %44 : i32 to index
    %c1_32 = arith.constant 1 : index
    %c0_33 = arith.constant 0 : index
    %46 = vector.load %arg2[%c0_31, %45, %c1_32, %c0_33] : memref<1x18x18x4xf32, #tpu.memory_space<vmem>>, vector<1x8x16x4xf32>
    %47 = vector.shape_cast %46 : vector<1x8x16x4xf32> to vector<8x16x4xf32>
    %48 = vector.shape_cast %47 : vector<8x16x4xf32> to vector<128x4xf32>
    %c0_34 = arith.constant 0 : index
    %c28 = arith.constant 28 : index
    %49 = vector.load %arg6[%c0_34, %c28] : memref<128x36xf32, #tpu.memory_space<vmem>>, vector<128x4xf32>
    tpu.vector_store %arg6[%c0_34, %c28], %48 {strides = array<i32>} : memref<128x36xf32, #tpu.memory_space<vmem>>, vector<128x4xf32>,
    %c2_i32_35 = arith.constant 2 : i32
    %50 = arith.addi %1, %c2_i32_35 : i32
    %c0_36 = arith.constant 0 : index
    %51 = arith.index_cast %50 : i32 to index
    %c2_37 = arith.constant 2 : index
    %c0_38 = arith.constant 0 : index
    %52 = vector.load %arg2[%c0_36, %51, %c2_37, %c0_38] : memref<1x18x18x4xf32, #tpu.memory_space<vmem>>, vector<1x8x16x4xf32>
    %53 = vector.shape_cast %52 : vector<1x8x16x4xf32> to vector<8x16x4xf32>
    %54 = vector.shape_cast %53 : vector<8x16x4xf32> to vector<128x4xf32>
    %c0_39 = arith.constant 0 : index
    %c32 = arith.constant 32 : index
    %55 = vector.load %arg6[%c0_39, %c32] : memref<128x36xf32, #tpu.memory_space<vmem>>, vector<128x4xf32>
    tpu.vector_store %arg6[%c0_39, %c32], %54 {strides = array<i32>} : memref<128x36xf32, #tpu.memory_space<vmem>>, vector<128x4xf32>,
    %c0_40 = arith.constant 0 : index
    %c0_41 = arith.constant 0 : index
    %56 = vector.load %arg6[%c0_40, %c0_41] : memref<128x36xf32, #tpu.memory_space<vmem>>, vector<128x36xf32>
    %c0_42 = arith.constant 0 : index
    %c0_43 = arith.constant 0 : index
    %57 = vector.load %arg3[%c0_42, %c0_43] : memref<36x128xf32, #tpu.memory_space<vmem>>, vector<36x128xf32>
    %cst = arith.constant dense<0.000000e+00> : vector<128x128xf32>
    %58 = tpu.matmul %56, %57, %cst {dimension_numbers = #tpu.dot_dimension_numbers<[1], [0], [0], [1], [0, 0, 1, 1], [], []>} : vector<128x36xf32>, vector<36x128xf32>, vector<128x128xf32> -> vector<128x128xf32>
    %c0_44 = arith.constant 0 : index
    %c0_45 = arith.constant 0 : index
    %59 = vector.load %arg4[%c0_44, %c0_45] : memref<2x128xf32, #tpu.memory_space<vmem>>, vector<1x128xf32>
    %c1_46 = arith.constant 1 : index
    %c0_47 = arith.constant 0 : index
    %60 = vector.load %arg4[%c1_46, %c0_47] : memref<2x128xf32, #tpu.memory_space<vmem>>, vector<1x128xf32>
    %61 = vector.broadcast %59 : vector<1x128xf32> to vector<128x128xf32>
    %62 = arith.addf %58, %61 : vector<128x128xf32>
    %cst_48 = arith.constant 0.000000e+00 : f32
    %63 = vector.broadcast %cst_48 : f32 to vector<128x128xf32>
    %64 = arith.cmpf oge, %62, %63 : vector<128x128xf32>
    %65 = vector.broadcast %60 : vector<1x128xf32> to vector<128x128xf32>
    %66 = arith.mulf %65, %62 : vector<128x128xf32>
    %67 = arith.select %64, %62, %66 : vector<128x128xi1>, vector<128x128xf32>
    %68 = vector.shape_cast %67 : vector<128x128xf32> to vector<8x16x128xf32>
    %c0_49 = arith.constant 0 : index
    %c0_50 = arith.constant 0 : index
    %c0_51 = arith.constant 0 : index
    %c0_52 = arith.constant 0 : index
    %69 = vector.load %arg5[%c0_49, %c0_50, %c0_51, %c0_52] : memref<1x8x16x128xf32, #tpu.memory_space<vmem>>, vector<1x8x16x128xf32>
    %70 = vector.shape_cast %69 : vector<1x8x16x128xf32> to vector<8x16x128xf32>
    %71 = vector.shape_cast %68 : vector<8x16x128xf32> to vector<1x8x16x128xf32>
    tpu.vector_store %arg5[%c0_49, %c0_50, %c0_51, %c0_52], %71 {strides = array<i32>} : memref<1x8x16x128xf32, #tpu.memory_space<vmem>>, vector<1x8x16x128xf32>,
    return
  }
  func.func @transform_0(%arg0: i32, %arg1: i32) -> (i32, i32, i32, i32) {
    %c0_i32 = arith.constant 0 : i32
    %c0_i32_0 = arith.constant 0 : i32
    %c0_i32_1 = arith.constant 0 : i32
    %c0_i32_2 = arith.constant 0 : i32
    return %arg0, %c0_i32, %c0_i32_0, %c0_i32_1 : i32, i32, i32, i32
  }
  func.func @transform_1(%arg0: i32, %arg1: i32) -> (i32, i32) {
    %c0_i32 = arith.constant 0 : i32
    %c0_i32_0 = arith.constant 0 : i32
    %c0_i32_1 = arith.constant 0 : i32
    return %c0_i32, %c0_i32_0 : i32, i32
  }
  func.func @transform_2(%arg0: i32, %arg1: i32) -> (i32, i32) {
    %c0_i32 = arith.constant 0 : i32
    %c0_i32_0 = arith.constant 0 : i32
    %c0_i32_1 = arith.constant 0 : i32
    return %c0_i32, %c0_i32_0 : i32, i32
  }
  func.func @transform_3(%arg0: i32, %arg1: i32) -> (i32, i32, i32, i32) {
    %c0_i32 = arith.constant 0 : i32
    %c0_i32_0 = arith.constant 0 : i32
    %c0_i32_1 = arith.constant 0 : i32
    return %arg0, %arg1, %c0_i32, %c0_i32_0 : i32, i32, i32, i32
  }
}

</mosaic_0001>

<bundles_post_ra>
// kernel: tpu_custom_call.1
= control target key start
LH: loop header
LB: loop body
LE: loop exit
PB: predicated region body
PF: predicated region fallthrough
CT: control target
= control target key end

     0   :  { %8 = vsyncpa [#allocation4], 0  ;;  %s2480_s0 = inlined_call_operand.vmem [shape: f32[2,18,18,4], index: 0, kind: input, shape index: {}]   ;;  %s2481_s1 = inlined_call_operand.vmem [shape: f32[36,128], index: 1, kind: input, shape index: {}]   ;;  %s2482_s2 = inlined_call_operand.vmem [shape: f32[2,128], index: 2, kind: input, shape index: {}]   ;;  %s2483_s3 = inlined_call_operand.hbm [shape: f32[2,16,16,128], index: 3, kind: output, shape index: {}]  }
   0x1   :  { %10 = vsyncpa [#allocation4 + $0x1], 0  ;;  %s1810_s12 = smov 0   ;;  %s1812_s13 = smov 0  }
   0x2   :  { %s1814_s14 = smov 0   ;;  %s1816_s15 = smov 0  }
   0x3   :  { %s1818_s16 = smov 0   ;;  %s1820_s17 = smov 0  }
   0x4   :  { %s1822_s18 = smov 0   ;;  %s1824_s19 = smov 0  }
   0x5 LB: > { %s1398_s20 = sadd.s32 4294967295, %s1778_s19   ;;  %s1399_s21 = sadd.s32 4294967294, %s1778_s19   ;;  %s1778_s19 = sphi %s1824_s19, %s16_s19   ;;  %s1774_s18 = sphi %s1822_s18, %s2495_s18   ;;  %s1770_s17 = sphi %s1820_s17, %s2494_s17   ;;  %s1766_s16 = sphi %s1818_s16, %s2493_s16   ;;  %s1762_s15 = sphi %s1816_s15, %s2492_s15   ;;  %s1758_s14 = sphi %s1814_s14, %s2491_s14   ;;  %s1754_s13 = sphi %s1812_s13, %s2490_s13   ;;  %s1750_s12 = sphi %s1810_s12, %s2489_s12  }
   0x6   : > { %s25_s22 = sadd.s32 1, %s1770_s17  ;;  %s28_s23 = sadd.s32 1, %s1774_s18 }
   0x7   : > { %p26_p0 = scmp.ge.s32.totalorder %s25_s22, 2  ;;  %p115_p1 = scmp.ne.s32.totalorder %s1758_s14, %s1754_s13 }
   0x8   : > { %p116_p2 = scmp.eq.s32.totalorder %s1398_s20, 3  ;;  %p121_p5 = scmp.ne.s32.totalorder %s1754_s13, %s1750_s12 }
   0x9   : > { %s2497_s22 = smov (%p26_p0, %s25_s22), 0  ;;  %s2499_s23 = smov (!%p26_p0, %s28_s23), %s1774_s18 }
   0xa   : > { %s101_s24 = ssub.s32 %s1770_s17, %s2497_s22  ;;  %p1861_p3 = por %p116_p2, %p115_p1 }
   0xb   : > { %p30_p4 = scmp.ge.s32.totalorder %s2499_s23, 2  ;;  %p122_p6 = scmp.eq.s32.totalorder %s1399_s21, 3 }
   0xc   : > { %p1402_p7 = scmp.ge.s32.totalorder %s1778_s19, 1  ;;  %p154_p9 = scmp.lt.s32.totalorder %s1778_s19, 5 }
   0xd   : > { %s2501_s23 = smov (%p30_p4, %s2499_s23), 0  ;;  %p1870_p8 = por %p122_p6, %p121_p5 }
   0xe   : > { %s100_s27 = ssub.s32 %s1774_s18, %s2501_s23  ;;  %s105_s28 = sadd.s32 1, %s1758_s14 }
   0xf   : > { %s102_s29 = sor.u32 %s101_s24, %s100_s27  ;;  %p155_p10 = pnand %p1402_p7, %p154_p9 }
  0x10   : > { %p103_p11 = scmp.eq.s32.totalorder %s102_s29, 0  ;;  %p178_p12 = scmp.lt.s32.totalorder (!%p155_p10), %s1766_s16, 1  ;;  %vm203_vm0 = vcmask (!%p155_p10), 31744   ;;  %v1018_v38 = vld [vmem:[%s2481_s1] sm:$0xff] (!%p155_p10)  ;;  %v1019_v39 = vld [vmem:[%s2481_s1 + $0x8] sm:$0xff] (!%p155_p10)  ;;  %v1020_v41 = vld [vmem:[%s2481_s1 + $0x10] sm:$0xff] (!%p155_p10) }
  0x11   : > { %158 = sbr.rel (%p155_p10) target bundleno = 640 (0x280), region = 32  ;;  %s1780_s11 = smov (!%p155_p10), 4   ;;  %v1589_v40 = vpack.c.bf16 (!%p155_p10), %v1019_v39, %v1018_v38  ;;  %v1021_v42 = vld [vmem:[%s2481_s1 + $0x18] sm:$0xff] (!%p155_p10)  ;;  %v1022_v44 = vld [vmem:[%s2481_s1 + $0x20] sm:$0xf] (!%p155_p10)  ;;  %vm1078_vm1 = vcmask (!%p155_p10), 1043456  }
  0x12   : > { %s1879_s30 = scalar_select %p103_p11, %s1758_s14, %s105_s28  }
  0x13   : > { %s1406_s5 = smul.u32 (!%p155_p10), 192, %s1762_s15  ;;  %s1781_s20 = smov (!%p155_p10), 8   ;;  %1590 = vmatprep.subr.bf16.mxu0 (!%p155_p10), %v1589_v40  ;;  %1597 = vmatprep.subr.bf16.mxu1 (!%p155_p10), %v1589_v40  ;;  %v1593_v43 = vpack.c.bf16 (!%p155_p10), %v1021_v42, %v1020_v41  ;;  %vm300_vm2 = vcmask (!%p155_p10), 64544   ;;  %vm397_vm3 = vcmask (!%p155_p10), 97344   ;;  %vm497_vm4 = vcmask (!%p155_p10), 130144  }
  0x14   : > { %s1782_s21 = smov (!%p155_p10), 12   ;;  %s1783_s24 = smov (!%p155_p10), 16   ;;  %1592 = vmatpush3.bf16.msra.mxu0 (!%p155_p10), %v1589_v40  ;;  %1600 = vmatpush3.bf16.msra.mxu1 (!%p155_p10), %v1589_v40  ;;  %vm594_vm5 = vcmask (!%p155_p10), 162944   ;;  %vm691_vm6 = vcmask (!%p155_p10), 195744   ;;  %vm791_vm7 = vcmask (!%p155_p10), 228544   ;;  %vm888_vm8 = vcmask (!%p155_p10), 261344  }
  0x15   : > { %s1784_s27 = smov (!%p155_p10), 20   ;;  %s1785_s28 = smov (!%p155_p10), 24   ;;  %1594 = vmatprep.subr.bf16.mxu0 (!%p155_p10), %v1593_v43  ;;  %1598 = vmatprep.subr.bf16.mxu1 (!%p155_p10), %v1593_v43  ;;  %vm985_vm9 = vcmask (!%p155_p10), 294144   ;;  %vm1029_vm10 = vcmask (!%p155_p10), 293888  }
  0x16   : > { %s2484_s29 = smov (!%p155_p10), 28   ;;  %s1787_s8 = smov (!%p155_p10), 32  }
  0x17   : > { %s2488_s7 = smov (!%p155_p10), 28  }
  0x18   : > { %s179_s4 = scalar_select %p178_p12, %s1766_s16, 1  ;;  %1596 = vmatpush3.bf16.msra.mxu0 %v1593_v43  ;;  %1601 = vmatpush3.bf16.msra.mxu1 %v1593_v43 }
  0x19   : > { %1563 = vmatprep.subr.msk.mxu0 %vm1078_vm1, %v1022_v44  ;;  %1599 = vmatprep.subr.msk.mxu1 %vm1078_vm1, %v1022_v44 }
  0x1a   : > { %s1603_s6 = smul.u32 432, %s179_s4  ;;  %s1529_s4 = sshll.u32 %s1766_s16, 5 }
  0x1c   : > { %s182_s9 = scalar_lea.vmem %s2480_s0, %s1603_s6  ;;  %1564 = vmatpush3.msk.msra.mxu0 %vm1078_vm1, %v1022_v44  ;;  %1602 = vmatpush3.msk.msra.mxu1 %vm1078_vm1, %v1022_v44 }
  0x1d   : > { %s1887_s10 = scalar_lea.vmem %s182_s9, %s1406_s5  ;;  %s1533_s9 = sshll.u32 %s1762_s15, 4 }
  0x1e   : > { %v221_v0 = vld [vmem:[%s1887_s10 + $0x9] sm:$0xff]  ;;  %v220_v1 = vld [vmem:[%s1887_s10 + $0x1] sm:$0xff]  ;;  %v1900_v4 = vld [vmem:[%s1887_s10 + $0x78] sm:$0xff]  ;;  %s1309_s5 = sadd.s32 %s1533_s9, %s1529_s4 }
  0x1f   : > { %254 = vrot.lane.b32.xlu1 %v221_v0, %s1780_s11  ;;  %252 = vrot.lane.b32.xlu0 %v220_v1, %s1780_s11  ;;  %v1894_v2 = vld [vmem:[%s1887_s10 + $0x69] sm:$0xff]  ;;  %v1897_v3 = vld [vmem:[%s1887_s10 + $0x61] sm:$0xff]  ;;  %214 = vst.msk [vmem:[#allocation2 + $0x50] sm:$0xff] %vm203_vm0, %v1900_v4 }
  0x20   : > { %v1409_v5 = vld [vmem:[%s1887_s10 + $0x18] sm:$0xff]  ;;  %v1904_v6 = vld [vmem:[%s1887_s10 + $0x80] sm:$0xff]  ;;  %v1922_v10 = vld [vmem:[%s1887_s10 + $0x90] sm:$0xff] }
  0x21   : > { %v1410_v7 = vld [vmem:[%s1887_s10 + $0x20] sm:$0xff]  ;;  %206 = vst.msk [vmem:[#allocation2 + $0x10] sm:$0xff] %vm203_vm0, %v1409_v5  ;;  %215 = vst.msk [vmem:[#allocation2 + $0x58] sm:$0xff] %vm203_vm0, %v1904_v6  ;;  %v1925_v11 = vld [vmem:[%s1887_s10 + $0x30] sm:$0xff] }
  0x22   : > { %207 = vst.msk [vmem:[#allocation2 + $0x18] sm:$0xff] %vm203_vm0, %v1410_v7  ;;  %v1918_v8 = vld [vmem:[%s1887_s10 + $0x62] sm:$0xff]  ;;  %v1928_v12 = vld [vmem:[%s1887_s10 + $0x98] sm:$0xff]  ;;  %216 = vst.msk [vmem:[#allocation2 + $0x60] sm:$0xff] %vm203_vm0, %v1922_v10 }
  0x23   : > { %270 = vrot.lane.b32.xlu1 %v1894_v2, %s1780_s11  ;;  %268 = vrot.lane.b32.xlu0 %v1897_v3, %s1780_s11  ;;  %v317_v9 = vld [vmem:[%s1887_s10 + $0x2] sm:$0xff]  ;;  %v1931_v13 = vld [vmem:[%s1887_s10 + $0x38] sm:$0xff]  ;;  %208 = vst.msk [vmem:[#allocation2 + $0x20] sm:$0xff] %vm203_vm0, %v1925_v11  ;;  %217 = vst.msk [vmem:[#allocation2 + $0x68] sm:$0xff] %vm203_vm0, %v1928_v12 }
  0x24   : > { %209 = vst.msk [vmem:[#allocation2 + $0x28] sm:$0xff] %vm203_vm0, %v1931_v13  ;;  %v1945_v14 = vld [vmem:[%s1887_s10 + $0x6a] sm:$0xff]  ;;  %v187_v17 = vld [vmem:[%s1887_s10] sm:$0xff]  ;;  %v1499_v36 = vld [vmem:[%s1887_s10 + $0x92] sm:$0xff] }
  0x25   : > { %v318_v15 = vld [vmem:[%s1887_s10 + $0xa] sm:$0xff]  ;;  %204 = vst.msk [vmem:[#allocation2] sm:$0xff] %vm203_vm0, %v187_v17  ;;  %v1965_v21 = vld [vmem:[%s1887_s10 + $0x60] sm:$0xff]  ;;  %v1491_v37 = vld [vmem:[%s1887_s10 + $0x32] sm:$0xff] }
  0x26   : > { %v188_v16 = vld [vmem:[%s1887_s10 + $0x8] sm:$0xff]  ;;  %212 = vst.msk [vmem:[#allocation2 + $0x40] sm:$0xff] %vm203_vm0, %v1965_v21  ;;  %v1976_v22 = vld [vmem:[%s1887_s10 + $0xb0] sm:$0xff]  ;;  %v1992_v24 = vld [vmem:[%s1887_s10 + $0x79] sm:$0xff] }
  0x27   : > { %365 = vrot.lane.b32.xlu1 %v1918_v8, %s1781_s20  ;;  %349 = vrot.lane.b32.xlu0 %v317_v9, %s1781_s20  ;;  %205 = vst.msk [vmem:[#allocation2 + $0x8] sm:$0xff] %vm203_vm0, %v188_v16  ;;  %v1952_v18 = vld [vmem:[%s1887_s10 + $0xa8] sm:$0xff]  ;;  %v1979_v23 = vld [vmem:[%s1887_s10 + $0x50] sm:$0xff]  ;;  %219 = vst.msk [vmem:[#allocation2 + $0x78] sm:$0xff] %vm203_vm0, %v1976_v22 }
  0x28   : > { %v1955_v19 = vld [vmem:[%s1887_s10 + $0x48] sm:$0xff]  ;;  %218 = vst.msk [vmem:[#allocation2 + $0x70] sm:$0xff] %vm203_vm0, %v1952_v18  ;;  %211 = vst.msk [vmem:[#allocation2 + $0x38] sm:$0xff] %vm203_vm0, %v1979_v23  ;;  %v1425_v25 = vld [vmem:[%s1887_s10 + $0x19] sm:$0xff] }
  0x29   : > { %v1962_v20 = vld [vmem:[%s1887_s10 + $0x68] sm:$0xff]  ;;  %210 = vst.msk [vmem:[#allocation2 + $0x30] sm:$0xff] %vm203_vm0, %v1955_v19  ;;  %v2009_v28 = vld [vmem:[%s1887_s10 + $0x7a] sm:$0xff]  ;;  %v1483_v32 = vld [vmem:[%s1887_s10 + $0x91] sm:$0xff] }
  0x2a   : > { %213 = vst.msk [vmem:[#allocation2 + $0x48] sm:$0xff] %vm203_vm0, %v1962_v20  ;;  %v2002_v26 = vld [vmem:[%s1887_s10 + $0x81] sm:$0xff]  ;;  %v1475_v33 = vld [vmem:[%s1887_s10 + $0x31] sm:$0xff]  ;;  %v1484_v34 = vld [vmem:[%s1887_s10 + $0x99] sm:$0xff] }
  0x2b   : > { %367 = vrot.lane.b32.xlu1 %v1945_v14, %s1781_s20  ;;  %351 = vrot.lane.b32.xlu0 %v318_v15, %s1781_s20  ;;  %v1426_v27 = vld [vmem:[%s1887_s10 + $0x21] sm:$0xff]  ;;  %v1476_v35 = vld [vmem:[%s1887_s10 + $0x39] sm:$0xff] }
  0x2c   : > { %v1441_v29 = vld [vmem:[%s1887_s10 + $0x1a] sm:$0xff]  ;;  %v2022_v30 = vld [vmem:[%s1887_s10 + $0x82] sm:$0xff]  ;;  %v1486_v63 = vld [vmem:[%s1887_s10 + $0xb1] sm:$0xff] }
  0x2d   : > { %v1442_v31 = vld [vmem:[%s1887_s10 + $0x22] sm:$0xff]  ;;  %v1500_v45 = vld [vmem:[%s1887_s10 + $0x9a] sm:$0xff]  ;;  %v1478_v0 = vld [vmem:[%s1887_s10 + $0x51] sm:$0xff] }
  0x2e   : > { %v1492_v46 = vld [vmem:[%s1887_s10 + $0x3a] sm:$0xff]  ;;  %v1485_v55 = vld [vmem:[%s1887_s10 + $0xa9] sm:$0xff] }
  0x2f   : > { %465 = vrot.lane.b32.xlu1 %v1900_v4, %s1782_s21  ;;  %449 = vrot.lane.b32.xlu0 %v1409_v5, %s1782_s21  ;;  %v1477_v56 = vld [vmem:[%s1887_s10 + $0x49] sm:$0xff] }
  0x30   : > { %v1493_v9 = vld [vmem:[%s1887_s10 + $0x4a] sm:$0xff] }
  0x31   : > { %v1472_v42 = vld [vmem:[%s1887_s10 + $0xc8] sm:$0xff] }
  0x33   : > { %467 = vrot.lane.b32.xlu1 %v1904_v6, %s1782_s21  ;;  %451 = vrot.lane.b32.xlu0 %v1410_v7, %s1782_s21  ;;  %v1501_v7 = vld [vmem:[%s1887_s10 + $0xaa] sm:$0xff] }
  0x37   : > { %562 = vrot.lane.b32.xlu1 %v1992_v24, %s1783_s24  ;;  %546 = vrot.lane.b32.xlu0 %v1425_v25, %s1783_s24 }
  0x3b   : > { %272 = vrot.lane.b32.xlu1 %v1992_v24, %s1780_s11  ;;  %256 = vrot.lane.b32.xlu0 %v1425_v25, %s1780_s11 }
  0x3f   : > { %564 = vrot.lane.b32.xlu1 %v2002_v26, %s1783_s24  ;;  %548 = vrot.lane.b32.xlu0 %v1426_v27, %s1783_s24 }
  0x43   : > { %659 = vrot.lane.b32.xlu1 %v2009_v28, %s1784_s27  ;;  %643 = vrot.lane.b32.xlu0 %v1441_v29, %s1784_s27 }
  0x47   : > { %274 = vrot.lane.b32.xlu1 %v2002_v26, %s1780_s11  ;;  %258 = vrot.lane.b32.xlu0 %v1426_v27, %s1780_s11 }
  0x4b   : > { %369 = vrot.lane.b32.xlu1 %v2009_v28, %s1781_s20  ;;  %353 = vrot.lane.b32.xlu0 %v1441_v29, %s1781_s20 }
  0x4f   : > { %661 = vrot.lane.b32.xlu1 %v2022_v30, %s1784_s27  ;;  %645 = vrot.lane.b32.xlu0 %v1442_v31, %s1784_s27 }
  0x53   : > { %759 = vrot.lane.b32.xlu1 %v1922_v10, %s1785_s28  ;;  %743 = vrot.lane.b32.xlu0 %v1925_v11, %s1785_s28 }
  0x57   : > { %371 = vrot.lane.b32.xlu1 %v2022_v30, %s1781_s20  ;;  %355 = vrot.lane.b32.xlu0 %v1442_v31, %s1781_s20 }
  0x5b   : > { %469 = vrot.lane.b32.xlu1 %v1922_v10, %s1782_s21  ;;  %453 = vrot.lane.b32.xlu0 %v1925_v11, %s1782_s21 }
  0x5f   : > { %761 = vrot.lane.b32.xlu1 %v1928_v12, %s1785_s28  ;;  %745 = vrot.lane.b32.xlu0 %v1931_v13, %s1785_s28 }
  0x63   : > { %856 = vrot.lane.b32.xlu1 %v1483_v32, %s2484_s29  ;;  %840 = vrot.lane.b32.xlu0 %v1475_v33, %s2484_s29 }
  0x67   : > { %471 = vrot.lane.b32.xlu1 %v1928_v12, %s1782_s21  ;;  %455 = vrot.lane.b32.xlu0 %v1931_v13, %s1782_s21 }
  0x6b   : > { %566 = vrot.lane.b32.xlu1 %v1483_v32, %s1783_s24  ;;  %550 = vrot.lane.b32.xlu0 %v1475_v33, %s1783_s24 }
  0x6f   : > { %858 = vrot.lane.b32.xlu1 %v1484_v34, %s2484_s29  ;;  %842 = vrot.lane.b32.xlu0 %v1476_v35, %s2484_s29  ;;  %s1530_s29 = sshll.u32 %s1309_s5, 7 }
  0x73   : > { %953 = vrot.lane.b32.xlu1 %v1499_v36, %s1787_s8  ;;  %937 = vrot.lane.b32.xlu0 %v1491_v37, %s1787_s8 }
  0x77   : > { %276 = vrot.lane.b32.xlu1 %v1483_v32, %s1780_s11  ;;  %260 = vrot.lane.b32.xlu0 %v1475_v33, %s1780_s11 }
  0x7b   : > { %568 = vrot.lane.b32.xlu1 %v1484_v34, %s1783_s24  ;;  %552 = vrot.lane.b32.xlu0 %v1476_v35, %s1783_s24 }
  0x7f   : > { %663 = vrot.lane.b32.xlu1 %v1499_v36, %s1784_s27  ;;  %647 = vrot.lane.b32.xlu0 %v1491_v37, %s1784_s27 }
  0x83   : > { %955 = vrot.lane.b32.xlu1 %v1500_v45, %s1787_s8  ;;  %939 = vrot.lane.b32.xlu0 %v1492_v46, %s1787_s8 }
  0x87   : > { %278 = vrot.lane.b32.xlu1 %v1484_v34, %s1780_s11  ;;  %262 = vrot.lane.b32.xlu0 %v1476_v35, %s1780_s11  ;;  %v1471_v35 = vld [vmem:[%s1887_s10 + $0xc0] sm:$0xff] }
  0x8b   : > { %373 = vrot.lane.b32.xlu1 %v1499_v36, %s1781_s20  ;;  %357 = vrot.lane.b32.xlu0 %v1491_v37, %s1781_s20 }
  0x8f   : > { %665 = vrot.lane.b32.xlu1 %v1500_v45, %s1784_s27  ;;  %649 = vrot.lane.b32.xlu0 %v1492_v46, %s1784_s27 }
  0x91   : > { %v255_v47 = vpop.permute.xlu1 %254  ;;  %v253_v48 = vpop.permute.xlu0 %252 }
  0x92   : > { %302 = vst.msk [vmem:[#allocation2 + $0x8] sm:$0xff] %vm300_vm2, %v255_v47  ;;  %301 = vst.msk [vmem:[#allocation2] sm:$0xff] %vm300_vm2, %v253_v48 }
  0x93   : > { %763 = vrot.lane.b32.xlu1 %v1952_v18, %s1785_s28  ;;  %747 = vrot.lane.b32.xlu0 %v1955_v19, %s1785_s28 }
  0x95   : > { %v271_v49 = vpop.permute.xlu1 %270  ;;  %v269_v50 = vpop.permute.xlu0 %268 }
  0x96   : > { %310 = vst.msk [vmem:[#allocation2 + $0x48] sm:$0xff] %vm300_vm2, %v271_v49  ;;  %309 = vst.msk [vmem:[#allocation2 + $0x40] sm:$0xff] %vm300_vm2, %v269_v50 }
  0x97   : > { %375 = vrot.lane.b32.xlu1 %v1500_v45, %s1781_s20  ;;  %359 = vrot.lane.b32.xlu0 %v1492_v46, %s1781_s20  ;;  %v1487_v45 = vld [vmem:[%s1887_s10 + $0xc1] sm:$0xff] }
  0x99   : > { %v366_v51 = vpop.permute.xlu1 %365  ;;  %v350_v52 = vpop.permute.xlu0 %349 }
  0x9a   : > { %406 = vst.msk [vmem:[#allocation2 + $0x40] sm:$0xff] %vm397_vm3, %v366_v51  ;;  %398 = vst.msk [vmem:[#allocation2] sm:$0xff] %vm397_vm3, %v350_v52  ;;  %v1488_v51 = vld [vmem:[%s1887_s10 + $0xc9] sm:$0xff] }
  0x9b   : > { %473 = vrot.lane.b32.xlu1 %v1952_v18, %s1782_s21  ;;  %457 = vrot.lane.b32.xlu0 %v1955_v19, %s1782_s21  ;;  %v1502_v19 = vld [vmem:[%s1887_s10 + $0xb2] sm:$0xff] }
  0x9d   : > { %v368_v53 = vpop.permute.xlu1 %367  ;;  %v352_v54 = vpop.permute.xlu0 %351 }
  0x9e   : > { %407 = vst.msk [vmem:[#allocation2 + $0x48] sm:$0xff] %vm397_vm3, %v368_v53  ;;  %399 = vst.msk [vmem:[#allocation2 + $0x8] sm:$0xff] %vm397_vm3, %v352_v54 }
  0x9f   : > { %765 = vrot.lane.b32.xlu1 %v1976_v22, %s1785_s28  ;;  %749 = vrot.lane.b32.xlu0 %v1979_v23, %s1785_s28 }
  0xa1   : > { %v466_v57 = vpop.permute.xlu1 %465  ;;  %v450_v58 = vpop.permute.xlu0 %449 }
  0xa2   : > { %506 = vst.msk [vmem:[#allocation2 + $0x40] sm:$0xff] %vm497_vm4, %v466_v57  ;;  %498 = vst.msk [vmem:[#allocation2] sm:$0xff] %vm497_vm4, %v450_v58 }
  0xa3   : > { %860 = vrot.lane.b32.xlu1 %v1485_v55, %s2488_s7  ;;  %844 = vrot.lane.b32.xlu0 %v1477_v56, %s2488_s7 }
  0xa5   : > { %v468_v59 = vpop.permute.xlu1 %467  ;;  %v452_v60 = vpop.permute.xlu0 %451 }
  0xa6   : > { %507 = vst.msk [vmem:[#allocation2 + $0x48] sm:$0xff] %vm497_vm4, %v468_v59  ;;  %499 = vst.msk [vmem:[#allocation2 + $0x8] sm:$0xff] %vm497_vm4, %v452_v60 }
  0xa7   : > { %475 = vrot.lane.b32.xlu1 %v1976_v22, %s1782_s21  ;;  %459 = vrot.lane.b32.xlu0 %v1979_v23, %s1782_s21  ;;  %v1494_v22 = vld [vmem:[%s1887_s10 + $0x52] sm:$0xff] }
  0xa9   : > { %v563_v61 = vpop.permute.xlu1 %562  ;;  %v547_v62 = vpop.permute.xlu0 %546 }
  0xaa   : > { %603 = vst.msk [vmem:[#allocation2 + $0x40] sm:$0xff] %vm594_vm5, %v563_v61  ;;  %595 = vst.msk [vmem:[#allocation2] sm:$0xff] %vm594_vm5, %v547_v62  ;;  %v1504_v61 = vld [vmem:[%s1887_s10 + $0xca] sm:$0xff] }
  0xab   : > { %570 = vrot.lane.b32.xlu1 %v1485_v55, %s1783_s24  ;;  %554 = vrot.lane.b32.xlu0 %v1477_v56, %s1783_s24 }
  0xad   : > { %v273_v1 = vpop.permute.xlu1 %272  ;;  %v257_v5 = vpop.permute.xlu0 %256 }
  0xae   : > { %311 = vst.msk [vmem:[#allocation2 + $0x50] sm:$0xff] %vm300_vm2, %v273_v1  ;;  %303 = vst.msk [vmem:[#allocation2 + $0x10] sm:$0xff] %vm300_vm2, %v257_v5  ;;  %v1473_v5 = vld [vmem:[%s1887_s10 + $0xd8] sm:$0xff] }
  0xaf   : > { %862 = vrot.lane.b32.xlu1 %v1486_v63, %s2488_s7  ;;  %846 = vrot.lane.b32.xlu0 %v1478_v0, %s2488_s7 }
  0xb1   : > { %v565_v10 = vpop.permute.xlu1 %564  ;;  %v549_v11 = vpop.permute.xlu0 %548 }
  0xb2   : > { %604 = vst.msk [vmem:[#allocation2 + $0x48] sm:$0xff] %vm594_vm5, %v565_v10  ;;  %596 = vst.msk [vmem:[#allocation2 + $0x8] sm:$0xff] %vm594_vm5, %v549_v11  ;;  %v1474_v10 = vld [vmem:[%s1887_s10 + $0xe0] sm:$0xff] }
  0xb3   : > { %957 = vrot.lane.b32.xlu1 %v1501_v7, %s1787_s8  ;;  %941 = vrot.lane.b32.xlu0 %v1493_v9, %s1787_s8 }
  0xb5   : > { %v660_v12 = vpop.permute.xlu1 %659  ;;  %v644_v13 = vpop.permute.xlu0 %643 }
  0xb6   : > { %700 = vst.msk [vmem:[#allocation2 + $0x40] sm:$0xff] %vm691_vm6, %v660_v12  ;;  %692 = vst.msk [vmem:[#allocation2] sm:$0xff] %vm691_vm6, %v644_v13 }
  0xb7   : > { %280 = vrot.lane.b32.xlu1 %v1485_v55, %s1780_s11  ;;  %264 = vrot.lane.b32.xlu0 %v1477_v56, %s1780_s11 }
  0xb9   : > { %v275_v15 = vpop.permute.xlu1 %274  ;;  %v259_v16 = vpop.permute.xlu0 %258 }
  0xba   : > { %312 = vst.msk [vmem:[#allocation2 + $0x58] sm:$0xff] %vm300_vm2, %v275_v15  ;;  %304 = vst.msk [vmem:[#allocation2 + $0x18] sm:$0xff] %vm300_vm2, %v259_v16 }
  0xbb   : > { %572 = vrot.lane.b32.xlu1 %v1486_v63, %s1783_s24  ;;  %556 = vrot.lane.b32.xlu0 %v1478_v0, %s1783_s24 }
  0xbd   : > { %v370_v17 = vpop.permute.xlu1 %369  ;;  %v354_v18 = vpop.permute.xlu0 %353 }
  0xbe   : > { %408 = vst.msk [vmem:[#allocation2 + $0x50] sm:$0xff] %vm397_vm3, %v370_v17  ;;  %400 = vst.msk [vmem:[#allocation2 + $0x10] sm:$0xff] %vm397_vm3, %v354_v18 }
  0xbf   : > { %667 = vrot.lane.b32.xlu1 %v1501_v7, %s1784_s27  ;;  %651 = vrot.lane.b32.xlu0 %v1493_v9, %s1784_s27 }
  0xc1   : > { %v662_v23 = vpop.permute.xlu1 %661  ;;  %v646_v25 = vpop.permute.xlu0 %645 }
  0xc2   : > { %701 = vst.msk [vmem:[#allocation2 + $0x48] sm:$0xff] %vm691_vm6, %v662_v23  ;;  %693 = vst.msk [vmem:[#allocation2 + $0x8] sm:$0xff] %vm691_vm6, %v646_v25 }
  0xc3   : > { %959 = vrot.lane.b32.xlu1 %v1502_v19, %s1787_s8  ;;  %943 = vrot.lane.b32.xlu0 %v1494_v22, %s1787_s8 }
  0xc5   : > { %v760_v27 = vpop.permute.xlu1 %759  ;;  %v744_v29 = vpop.permute.xlu0 %743 }
  0xc6   : > { %800 = vst.msk [vmem:[#allocation2 + $0x40] sm:$0xff] %vm791_vm7, %v760_v27  ;;  %792 = vst.msk [vmem:[#allocation2] sm:$0xff] %vm791_vm7, %v744_v29 }
  0xc7   : > { %282 = vrot.lane.b32.xlu1 %v1486_v63, %s1780_s11  ;;  %266 = vrot.lane.b32.xlu0 %v1478_v0, %s1780_s11 }
  0xc9   : > { %v372_v31 = vpop.permute.xlu1 %371  ;;  %v356_v32 = vpop.permute.xlu0 %355 }
  0xca   : > { %409 = vst.msk [vmem:[#allocation2 + $0x58] sm:$0xff] %vm397_vm3, %v372_v31  ;;  %401 = vst.msk [vmem:[#allocation2 + $0x18] sm:$0xff] %vm397_vm3, %v356_v32 }
  0xcb   : > { %377 = vrot.lane.b32.xlu1 %v1501_v7, %s1781_s20  ;;  %361 = vrot.lane.b32.xlu0 %v1493_v9, %s1781_s20 }
  0xcd   : > { %v470_v33 = vpop.permute.xlu1 %469  ;;  %v454_v34 = vpop.permute.xlu0 %453 }
  0xce   : > { %508 = vst.msk [vmem:[#allocation2 + $0x50] sm:$0xff] %vm497_vm4, %v470_v33  ;;  %500 = vst.msk [vmem:[#allocation2 + $0x10] sm:$0xff] %vm497_vm4, %v454_v34 }
  0xcf   : > { %669 = vrot.lane.b32.xlu1 %v1502_v19, %s1784_s27  ;;  %653 = vrot.lane.b32.xlu0 %v1494_v22, %s1784_s27 }
  0xd1   : > { %v762_v36 = vpop.permute.xlu1 %761  ;;  %v746_v37 = vpop.permute.xlu0 %745 }
  0xd2   : > { %801 = vst.msk [vmem:[#allocation2 + $0x48] sm:$0xff] %vm791_vm7, %v762_v36  ;;  %793 = vst.msk [vmem:[#allocation2 + $0x8] sm:$0xff] %vm791_vm7, %v746_v37 }
  0xd3   : > { %767 = vrot.lane.b32.xlu1 %v1471_v35, %s1785_s28  ;;  %751 = vrot.lane.b32.xlu0 %v1965_v21, %s1785_s28 }
  0xd5   : > { %v857_v38 = vpop.permute.xlu1 %856  ;;  %v841_v39 = vpop.permute.xlu0 %840 }
  0xd6   : > { %897 = vst.msk [vmem:[#allocation2 + $0x40] sm:$0xff] %vm888_vm8, %v857_v38  ;;  %889 = vst.msk [vmem:[#allocation2] sm:$0xff] %vm888_vm8, %v841_v39 }
  0xd7   : > { %379 = vrot.lane.b32.xlu1 %v1502_v19, %s1781_s20  ;;  %363 = vrot.lane.b32.xlu0 %v1494_v22, %s1781_s20 }
  0xd9   : > { %v472_v40 = vpop.permute.xlu1 %471  ;;  %v456_v41 = vpop.permute.xlu0 %455 }
  0xda   : > { %509 = vst.msk [vmem:[#allocation2 + $0x58] sm:$0xff] %vm497_vm4, %v472_v40  ;;  %501 = vst.msk [vmem:[#allocation2 + $0x18] sm:$0xff] %vm497_vm4, %v456_v41 }
  0xdb   : > { %477 = vrot.lane.b32.xlu1 %v1471_v35, %s1782_s21  ;;  %461 = vrot.lane.b32.xlu0 %v1965_v21, %s1782_s21 }
  0xdd   : > { %v567_v43 = vpop.permute.xlu1 %566  ;;  %v551_v44 = vpop.permute.xlu0 %550 }
  0xde   : > { %605 = vst.msk [vmem:[#allocation2 + $0x50] sm:$0xff] %vm594_vm5, %v567_v43  ;;  %597 = vst.msk [vmem:[#allocation2 + $0x10] sm:$0xff] %vm594_vm5, %v551_v44 }
  0xdf   : > { %769 = vrot.lane.b32.xlu1 %v1472_v42, %s1785_s28  ;;  %753 = vrot.lane.b32.xlu0 %v1962_v20, %s1785_s28 }
  0xe1   : > { %v859_v46 = vpop.permute.xlu1 %858  ;;  %v843_v47 = vpop.permute.xlu0 %842 }
  0xe2   : > { %898 = vst.msk [vmem:[#allocation2 + $0x48] sm:$0xff] %vm888_vm8, %v859_v46  ;;  %890 = vst.msk [vmem:[#allocation2 + $0x8] sm:$0xff] %vm888_vm8, %v843_v47 }
  0xe3   : > { %864 = vrot.lane.b32.xlu1 %v1487_v45, %s2488_s7  ;;  %848 = vrot.lane.b32.xlu0 %v1897_v3, %s2488_s7 }
  0xe5   : > { %v954_v21 = vpop.permute.xlu1 %953  ;;  %v938_v48 = vpop.permute.xlu0 %937 }
  0xe6   : > { %994 = vst.msk [vmem:[#allocation2 + $0x40] sm:$0xff] %vm985_vm9, %v954_v21  ;;  %986 = vst.msk [vmem:[#allocation2] sm:$0xff] %vm985_vm9, %v938_v48 }
  0xe7   : > { %479 = vrot.lane.b32.xlu1 %v1472_v42, %s1782_s21  ;;  %463 = vrot.lane.b32.xlu0 %v1962_v20, %s1782_s21 }
  0xe9   : > { %v277_v49 = vpop.permute.xlu1 %276  ;;  %v261_v50 = vpop.permute.xlu0 %260 }
  0xea   : > { %313 = vst.msk [vmem:[#allocation2 + $0x60] sm:$0xff] %vm300_vm2, %v277_v49  ;;  %305 = vst.msk [vmem:[#allocation2 + $0x20] sm:$0xff] %vm300_vm2, %v261_v50 }
  0xeb   : > { %574 = vrot.lane.b32.xlu1 %v1487_v45, %s1783_s24  ;;  %558 = vrot.lane.b32.xlu0 %v1897_v3, %s1783_s24  ;;  %v1503_v3 = vld [vmem:[%s1887_s10 + $0xc2] sm:$0xff] }
  0xed   : > { %v569_v52 = vpop.permute.xlu1 %568  ;;  %v553_v53 = vpop.permute.xlu0 %552  ;;  %v1002_v54 = vld [vmem:[#allocation2] sm:$0xff] }
  0xee   : > { %v1010_v55 = vld [vmem:[#allocation2 + $0x40] sm:$0xff]  ;;  %606 = vst.msk [vmem:[#allocation2 + $0x58] sm:$0xff] %vm594_vm5, %v569_v52  ;;  %598 = vst.msk [vmem:[#allocation2 + $0x18] sm:$0xff] %vm594_vm5, %v553_v53  ;;  %1565 = vmatprep.mubr.msk.f32.mxu0 %vm1029_vm10, %v1002_v54 }
  0xef   : > { %1577 = vmatprep.mubr.msk.f32.mxu1 %vm1029_vm10, %v1010_v55  ;;  %866 = vrot.lane.b32.xlu1 %v1488_v51, %s2488_s7 }
  0xf0   : > { %850 = vrot.lane.b32.xlu0 %v1894_v2, %s2488_s7 }
  0xf1   : > { %v664_v20 = vpop.permute.xlu1 %663  ;;  %v648_v56 = vpop.permute.xlu0 %647 }
  0xf2   : > { %702 = vst.msk [vmem:[#allocation2 + $0x50] sm:$0xff] %vm691_vm6, %v664_v20  ;;  %694 = vst.msk [vmem:[#allocation2 + $0x10] sm:$0xff] %vm691_vm6, %v648_v56 }
  0xf3   : > { %961 = vrot.lane.b32.xlu1 %v1503_v3, %s1787_s8 }
  0xf4   : > { %945 = vrot.lane.b32.xlu0 %v1918_v8, %s1787_s8 }
  0xf5   : > { %v956_v57 = vpop.permute.xlu1 %955  ;;  %v940_v58 = vpop.permute.xlu0 %939 }
  0xf6   : > { %995 = vst.msk [vmem:[#allocation2 + $0x48] sm:$0xff] %vm985_vm9, %v956_v57  ;;  %987 = vst.msk [vmem:[#allocation2 + $0x8] sm:$0xff] %vm985_vm9, %v940_v58 }
  0xf7   : > { %576 = vrot.lane.b32.xlu1 %v1488_v51, %s1783_s24 }
  0xf8   : > { %560 = vrot.lane.b32.xlu0 %v1894_v2, %s1783_s24 }
  0xf9   : > { %v279_v59 = vpop.permute.xlu1 %278  ;;  %v263_v60 = vpop.permute.xlu0 %262 }
  0xfa   : > { %314 = vst.msk [vmem:[#allocation2 + $0x68] sm:$0xff] %vm300_vm2, %v279_v59  ;;  %306 = vst.msk [vmem:[#allocation2 + $0x28] sm:$0xff] %vm300_vm2, %v263_v60 }
  0xfb   : > { %671 = vrot.lane.b32.xlu1 %v1503_v3, %s1784_s27 }
  0xfc   : > { %655 = vrot.lane.b32.xlu0 %v1918_v8, %s1784_s27 }
  0xfd   : > { %v374_v62 = vpop.permute.xlu1 %373  ;;  %v358_v63 = vpop.permute.xlu0 %357  ;;  %v1003_v0 = vld [vmem:[#allocation2 + $0x8] sm:$0xff] }
  0xfe   : > { %v1011_v1 = vld [vmem:[#allocation2 + $0x48] sm:$0xff]  ;;  %410 = vst.msk [vmem:[#allocation2 + $0x60] sm:$0xff] %vm397_vm3, %v374_v62  ;;  %402 = vst.msk [vmem:[#allocation2 + $0x20] sm:$0xff] %vm397_vm3, %v358_v63  ;;  %1566 = vmatmul.mubr.msk.f32.vlgmr.msra.gmra.mrb[0].mxu0 %vm1029_vm10, %v1003_v0 }
  0xff   : > { %1578 = vmatmul.mubr.msk.f32.vlgmr.msra.gmra.mrb[0].mxu1 %vm1029_vm10, %v1011_v1  ;;  %963 = vrot.lane.b32.xlu1 %v1504_v61, %s1787_s8 }
 0x100   : > { %947 = vrot.lane.b32.xlu0 %v1945_v14, %s1787_s8 }
 0x101   : > { %v666_v2 = vpop.permute.xlu1 %665  ;;  %v650_v8 = vpop.permute.xlu0 %649 }
 0x102   : > { %703 = vst.msk [vmem:[#allocation2 + $0x58] sm:$0xff] %vm691_vm6, %v666_v2  ;;  %695 = vst.msk [vmem:[#allocation2 + $0x18] sm:$0xff] %vm691_vm6, %v650_v8 }
 0x103   : > { %673 = vrot.lane.b32.xlu1 %v1504_v61, %s1784_s27 }
 0x104   : > { %657 = vrot.lane.b32.xlu0 %v1945_v14, %s1784_s27  ;;  %v1489_v14 = vld [vmem:[%s1887_s10 + $0xd9] sm:$0xff] }
 0x105   : > { %v764_v7 = vpop.permute.xlu1 %763  ;;  %v748_v9 = vpop.permute.xlu0 %747 }
 0x106   : > { %802 = vst.msk [vmem:[#allocation2 + $0x50] sm:$0xff] %vm791_vm7, %v764_v7  ;;  %794 = vst.msk [vmem:[#allocation2 + $0x10] sm:$0xff] %vm791_vm7, %v748_v9 }
 0x107   : > { %771 = vrot.lane.b32.xlu1 %v1473_v5, %s1785_s28 }
 0x108   : > { %755 = vrot.lane.b32.xlu0 %v1900_v4, %s1785_s28  ;;  %v1490_v4 = vld [vmem:[%s1887_s10 + $0xe1] sm:$0xff] }
 0x109   : > { %v376_v11 = vpop.permute.xlu1 %375  ;;  %v360_v12 = vpop.permute.xlu0 %359 }
 0x10a   : > { %411 = vst.msk [vmem:[#allocation2 + $0x68] sm:$0xff] %vm397_vm3, %v376_v11  ;;  %403 = vst.msk [vmem:[#allocation2 + $0x28] sm:$0xff] %vm397_vm3, %v360_v12 }
 0x10b   : > { %773 = vrot.lane.b32.xlu1 %v1474_v10, %s1785_s28 }
 0x10c   : > { %757 = vrot.lane.b32.xlu0 %v1904_v6, %s1785_s28  ;;  %v1505_v6 = vld [vmem:[%s1887_s10 + $0xda] sm:$0xff] }
 0x10d   : > { %v474_v13 = vpop.permute.xlu1 %473  ;;  %v458_v15 = vpop.permute.xlu0 %457 }
 0x10e   : > { %510 = vst.msk [vmem:[#allocation2 + $0x60] sm:$0xff] %vm497_vm4, %v474_v13  ;;  %502 = vst.msk [vmem:[#allocation2 + $0x20] sm:$0xff] %vm497_vm4, %v458_v15 }
 0x10f   : > { %868 = vrot.lane.b32.xlu1 %v1489_v14, %s2488_s7 }
 0x110   : > { %852 = vrot.lane.b32.xlu0 %v1992_v24, %s2488_s7  ;;  %v1506_v24 = vld [vmem:[%s1887_s10 + $0xe2] sm:$0xff]  ;;  %s175_s10 = sand.u32 1, %s1754_s13  }
 0x111   : > { %v766_v16 = vpop.permute.xlu1 %765  ;;  %v750_v17 = vpop.permute.xlu0 %749  ;;  %s1403_s24 = sshll.u32 %s175_s10, 7  ;;  %s2427_s11 = scalar_lea.sflag [#allocation4], %s175_s10 }
 0x112   : > { %803 = vst.msk [vmem:[#allocation2 + $0x58] sm:$0xff] %vm791_vm7, %v766_v16  ;;  %795 = vst.msk [vmem:[#allocation2 + $0x18] sm:$0xff] %vm791_vm7, %v750_v17 }
 0x113   : > { %870 = vrot.lane.b32.xlu1 %v1490_v4, %s2488_s7 }
 0x114   : > { %854 = vrot.lane.b32.xlu0 %v2002_v26, %s2488_s7  ;;  %s2417_s7 = scalar_lea.hbm %s2483_s3, %s1530_s29 }
 0x115   : > { %v861_v18 = vpop.permute.xlu1 %860  ;;  %v845_v19 = vpop.permute.xlu0 %844 }
 0x116   : > { %899 = vst.msk [vmem:[#allocation2 + $0x50] sm:$0xff] %vm888_vm8, %v861_v18  ;;  %891 = vst.msk [vmem:[#allocation2 + $0x10] sm:$0xff] %vm888_vm8, %v845_v19 }
 0x117   : > { %965 = vrot.lane.b32.xlu1 %v1505_v6, %s1787_s8 }
 0x118   : > { %949 = vrot.lane.b32.xlu0 %v2009_v28, %s1787_s8 }
 0x119   : > { %v476_v22 = vpop.permute.xlu1 %475  ;;  %v460_v23 = vpop.permute.xlu0 %459 }
 0x11a   : > { %511 = vst.msk [vmem:[#allocation2 + $0x68] sm:$0xff] %vm497_vm4, %v476_v22  ;;  %503 = vst.msk [vmem:[#allocation2 + $0x28] sm:$0xff] %vm497_vm4, %v460_v23 }
 0x11b   : > { %967 = vrot.lane.b32.xlu1 %v1506_v24, %s1787_s8 }
 0x11c   : > { %951 = vrot.lane.b32.xlu0 %v2022_v30, %s1787_s8  ;;  %s2373_s8 = scalar_lea.vmem [#allocation3], %s1403_s24  ;;  %s1788_s24 = smov [#allocation3]  }
 0x11d   : > { %v571_v26 = vpop.permute.xlu1 %570  ;;  %v555_v25 = vpop.permute.xlu0 %554  ;;  %s1312_s6 = sshll.u32 %s2373_s8, 4  ;;  %s1688_s27 = sshll.u32 %s1788_s24, 4  ;;  %s2419_s6 = int_to_ptr.vmem [resolvable:$true] %s1312_s6  ;;  %s1689_s27 = int_to_ptr.vmem [resolvable:$false] %s1688_s27 }
 0x11e   : > { %607 = vst.msk [vmem:[#allocation2 + $0x60] sm:$0xff] %vm594_vm5, %v571_v26  ;;  %599 = vst.msk [vmem:[#allocation2 + $0x20] sm:$0xff] %vm594_vm5, %v555_v25  ;;  %s1684_s21 = scalar_lea.vmem %s2419_s6, 2048  ;;  %s1690_s28 = scalar_lea.vmem %s1689_s27, 4096 }
 0x11f   : > { %p1685_p13 = scmp.ne.s32.totalorder %s2419_s6, %s1684_s21  ;;  %p1691_p2 = scmp.lt.s32.totalorder %s2419_s6, %s1689_s27 }
 0x120   : > { %p1692_p4 = scmp.lt.s32.totalorder %s1690_s28, %s1684_s21 }
 0x121   : > { %v863_v27 = vpop.permute.xlu1 %862  ;;  %v847_v28 = vpop.permute.xlu0 %846  ;;  %p1686_p0 = pnand %p1685_p13, %p1861_p3 }
 0x122   : > { %900 = vst.msk [vmem:[#allocation2 + $0x58] sm:$0xff] %vm888_vm8, %v863_v27  ;;  %892 = vst.msk [vmem:[#allocation2 + $0x18] sm:$0xff] %vm888_vm8, %v847_v28  ;;  %p1693_p5 = por %p1692_p4, %p1691_p2 }
 0x123   : > { %p1687_p1 = pneg %p1686_p0 }
 0x125   : > { %v958_v29 = vpop.permute.xlu1 %957  ;;  %v942_v31 = vpop.permute.xlu0 %941  ;;  %p1694_p6 = pnand %p1693_p5, %p1687_p1 }
 0x126   : > { %996 = vst.msk [vmem:[#allocation2 + $0x50] sm:$0xff] %vm985_vm9, %v958_v29  ;;  %988 = vst.msk [vmem:[#allocation2 + $0x10] sm:$0xff] %vm985_vm9, %v942_v31 }
 0x129   : > { %v281_v32 = vpop.permute.xlu1 %280  ;;  %v265_v30 = vpop.permute.xlu0 %264 }
 0x12a   : > { %315 = vst.msk [vmem:[#allocation2 + $0x70] sm:$0xff] %vm300_vm2, %v281_v32  ;;  %307 = vst.msk [vmem:[#allocation2 + $0x30] sm:$0xff] %vm300_vm2, %v265_v30  ;;  %v2356_v32 = vld [vmem:[%s2482_s2] ss:$0 sm:$0xff]  ;;  %v2363_v30 = vld [vmem:[%s2482_s2 + $0x1] ss:$0 sm:$0xff] }
 0x12d   : > { %v573_v33 = vpop.permute.xlu1 %572  ;;  %v557_v34 = vpop.permute.xlu0 %556  ;;  %v1004_v35 = vld [vmem:[#allocation2 + $0x10] sm:$0xff] }
 0x12e   : > { %v1012_v36 = vld [vmem:[#allocation2 + $0x50] sm:$0xff]  ;;  %608 = vst.msk [vmem:[#allocation2 + $0x68] sm:$0xff] %vm594_vm5, %v573_v33  ;;  %600 = vst.msk [vmem:[#allocation2 + $0x28] sm:$0xff] %vm594_vm5, %v557_v34  ;;  %1568 = vmatprep.mubr.msk.f32.mxu0 %vm1029_vm10, %v1004_v35 }
 0x12f   : > { %1580 = vmatprep.mubr.msk.f32.mxu1 %vm1029_vm10, %v1012_v36 }
 0x131   : > { %v668_v37 = vpop.permute.xlu1 %667  ;;  %v652_v38 = vpop.permute.xlu0 %651 }
 0x132   : > { %704 = vst.msk [vmem:[#allocation2 + $0x60] sm:$0xff] %vm691_vm6, %v668_v37  ;;  %696 = vst.msk [vmem:[#allocation2 + $0x20] sm:$0xff] %vm691_vm6, %v652_v38 }
 0x135   : > { %v960_v39 = vpop.permute.xlu1 %959  ;;  %v944_v40 = vpop.permute.xlu0 %943 }
 0x136   : > { %997 = vst.msk [vmem:[#allocation2 + $0x58] sm:$0xff] %vm985_vm9, %v960_v39  ;;  %989 = vst.msk [vmem:[#allocation2 + $0x18] sm:$0xff] %vm985_vm9, %v944_v40 }
 0x139   : > { %v283_v41 = vpop.permute.xlu1 %282  ;;  %v267_v42 = vpop.permute.xlu0 %266 }
 0x13a   : > { %316 = vst.msk [vmem:[#allocation2 + $0x78] sm:$0xff] %vm300_vm2, %v283_v41  ;;  %308 = vst.msk [vmem:[#allocation2 + $0x38] sm:$0xff] %vm300_vm2, %v267_v42 }
 0x13d   : > { %v378_v43 = vpop.permute.xlu1 %377  ;;  %v362_v44 = vpop.permute.xlu0 %361  ;;  %v1005_v45 = vld [vmem:[#allocation2 + $0x18] sm:$0xff] }
 0x13e   : > { %v1013_v46 = vld [vmem:[#allocation2 + $0x58] sm:$0xff]  ;;  %412 = vst.msk [vmem:[#allocation2 + $0x70] sm:$0xff] %vm397_vm3, %v378_v43  ;;  %404 = vst.msk [vmem:[#allocation2 + $0x30] sm:$0xff] %vm397_vm3, %v362_v44  ;;  %1569 = vmatmul.mubr.msk.f32.gmra.mrb[2].mxu0 %vm1029_vm10, %v1005_v45 }
 0x13f   : > { %1581 = vmatmul.mubr.msk.f32.gmra.mrb[2].mxu1 %vm1029_vm10, %v1013_v46 }
 0x141   : > { %v670_v47 = vpop.permute.xlu1 %669  ;;  %v654_v21 = vpop.permute.xlu0 %653 }
 0x142   : > { %705 = vst.msk [vmem:[#allocation2 + $0x68] sm:$0xff] %vm691_vm6, %v670_v47  ;;  %697 = vst.msk [vmem:[#allocation2 + $0x28] sm:$0xff] %vm691_vm6, %v654_v21 }
 0x145   : > { %v768_v48 = vpop.permute.xlu1 %767  ;;  %v752_v49 = vpop.permute.xlu0 %751 }
 0x146   : > { %804 = vst.msk [vmem:[#allocation2 + $0x60] sm:$0xff] %vm791_vm7, %v768_v48  ;;  %796 = vst.msk [vmem:[#allocation2 + $0x20] sm:$0xff] %vm791_vm7, %v752_v49 }
 0x149   : > { %v380_v50 = vpop.permute.xlu1 %379  ;;  %v364_v51 = vpop.permute.xlu0 %363 }
 0x14a   : > { %413 = vst.msk [vmem:[#allocation2 + $0x78] sm:$0xff] %vm397_vm3, %v380_v50  ;;  %405 = vst.msk [vmem:[#allocation2 + $0x38] sm:$0xff] %vm397_vm3, %v364_v51 }
 0x14d   : > { %v478_v52 = vpop.permute.xlu1 %477  ;;  %v462_v53 = vpop.permute.xlu0 %461 }
 0x14e   : > { %512 = vst.msk [vmem:[#allocation2 + $0x70] sm:$0xff] %vm497_vm4, %v478_v52  ;;  %504 = vst.msk [vmem:[#allocation2 + $0x30] sm:$0xff] %vm497_vm4, %v462_v53 }
 0x151   : > { %v770_v54 = vpop.permute.xlu1 %769  ;;  %v754_v55 = vpop.permute.xlu0 %753 }
 0x152   : > { %805 = vst.msk [vmem:[#allocation2 + $0x68] sm:$0xff] %vm791_vm7, %v770_v54  ;;  %797 = vst.msk [vmem:[#allocation2 + $0x28] sm:$0xff] %vm791_vm7, %v754_v55 }
 0x155   : > { %v865_v3 = vpop.permute.xlu1 %864  ;;  %v849_v20 = vpop.permute.xlu0 %848 }
 0x156   : > { %901 = vst.msk [vmem:[#allocation2 + $0x60] sm:$0xff] %vm888_vm8, %v865_v3  ;;  %893 = vst.msk [vmem:[#allocation2 + $0x20] sm:$0xff] %vm888_vm8, %v849_v20 }
 0x159   : > { %v480_v56 = vpop.permute.xlu1 %479  ;;  %v464_v57 = vpop.permute.xlu0 %463 }
 0x15a   : > { %513 = vst.msk [vmem:[#allocation2 + $0x78] sm:$0xff] %vm497_vm4, %v480_v56  ;;  %505 = vst.msk [vmem:[#allocation2 + $0x38] sm:$0xff] %vm497_vm4, %v464_v57 }
 0x15d   : > { %v575_v58 = vpop.permute.xlu1 %574  ;;  %v559_v59 = vpop.permute.xlu0 %558 }
 0x15e   : > { %609 = vst.msk [vmem:[#allocation2 + $0x70] sm:$0xff] %vm594_vm5, %v575_v58  ;;  %601 = vst.msk [vmem:[#allocation2 + $0x30] sm:$0xff] %vm594_vm5, %v559_v59 }
 0x161   : > { %v867_v60 = vpop.permute.xlu1 %866 }
 0x162   : > { %v851_v61 = vpop.permute.xlu0 %850  ;;  %902 = vst.msk [vmem:[#allocation2 + $0x68] sm:$0xff] %vm888_vm8, %v867_v60 }
 0x163   : > { %894 = vst.msk [vmem:[#allocation2 + $0x28] sm:$0xff] %vm888_vm8, %v851_v61 }
 0x165   : > { %v962_v62 = vpop.permute.xlu1 %961 }
 0x166   : > { %v946_v63 = vpop.permute.xlu0 %945  ;;  %998 = vst.msk [vmem:[#allocation2 + $0x60] sm:$0xff] %vm985_vm9, %v962_v62 }
 0x167   : > { %990 = vst.msk [vmem:[#allocation2 + $0x20] sm:$0xff] %vm985_vm9, %v946_v63 }
 0x169   : > { %v577_v0 = vpop.permute.xlu1 %576 }
 0x16a   : > { %v561_v1 = vpop.permute.xlu0 %560  ;;  %610 = vst.msk [vmem:[#allocation2 + $0x78] sm:$0xff] %vm594_vm5, %v577_v0 }
 0x16b   : > { %602 = vst.msk [vmem:[#allocation2 + $0x38] sm:$0xff] %vm594_vm5, %v561_v1 }
 0x16d   : > { %v672_v2 = vpop.permute.xlu1 %671  ;;  %v1014_v7 = vld [vmem:[#allocation2 + $0x60] sm:$0xff] }
 0x16e   : > { %v656_v8 = vpop.permute.xlu0 %655  ;;  %v1006_v5 = vld [vmem:[#allocation2 + $0x20] sm:$0xff]  ;;  %706 = vst.msk [vmem:[#allocation2 + $0x70] sm:$0xff] %vm691_vm6, %v672_v2  ;;  %1583 = vmatprep.mubr.msk.f32.mxu1 %vm1029_vm10, %v1014_v7 }
 0x16f   : > { %698 = vst.msk [vmem:[#allocation2 + $0x30] sm:$0xff] %vm691_vm6, %v656_v8  ;;  %1571 = vmatprep.mubr.msk.f32.mxu0 %vm1029_vm10, %v1006_v5 }
 0x171   : > { %v964_v9 = vpop.permute.xlu1 %963 }
 0x172   : > { %v948_v10 = vpop.permute.xlu0 %947  ;;  %999 = vst.msk [vmem:[#allocation2 + $0x68] sm:$0xff] %vm985_vm9, %v964_v9 }
 0x173   : > { %991 = vst.msk [vmem:[#allocation2 + $0x28] sm:$0xff] %vm985_vm9, %v948_v10 }
 0x175   : > { %v674_v11 = vpop.permute.xlu1 %673 }
 0x176   : > { %v658_v12 = vpop.permute.xlu0 %657  ;;  %707 = vst.msk [vmem:[#allocation2 + $0x78] sm:$0xff] %vm691_vm6, %v674_v11 }
 0x177   : > { %699 = vst.msk [vmem:[#allocation2 + $0x38] sm:$0xff] %vm691_vm6, %v658_v12 }
 0x179   : > { %v772_v14 = vpop.permute.xlu1 %771  ;;  %v1015_v4 = vld [vmem:[#allocation2 + $0x68] sm:$0xff] }
 0x17a   : > { %v756_v13 = vpop.permute.xlu0 %755  ;;  %v1007_v15 = vld [vmem:[#allocation2 + $0x28] sm:$0xff]  ;;  %806 = vst.msk [vmem:[#allocation2 + $0x70] sm:$0xff] %vm791_vm7, %v772_v14  ;;  %1584 = vmatmul.mubr.msk.f32.gmra.mrb[4].mxu1 %vm1029_vm10, %v1015_v4 }
 0x17b   : > { %798 = vst.msk [vmem:[#allocation2 + $0x30] sm:$0xff] %vm791_vm7, %v756_v13  ;;  %1572 = vmatmul.mubr.msk.f32.gmra.mrb[4].mxu0 %vm1029_vm10, %v1007_v15 }
 0x17d   : > { %v774_v16 = vpop.permute.xlu1 %773 }
 0x17e   : > { %v758_v17 = vpop.permute.xlu0 %757  ;;  %807 = vst.msk [vmem:[#allocation2 + $0x78] sm:$0xff] %vm791_vm7, %v774_v16 }
 0x17f   : > { %799 = vst.msk [vmem:[#allocation2 + $0x38] sm:$0xff] %vm791_vm7, %v758_v17 }
 0x181   : > { %v869_v6 = vpop.permute.xlu1 %868 }
 0x182   : > { %v853_v18 = vpop.permute.xlu0 %852  ;;  %903 = vst.msk [vmem:[#allocation2 + $0x70] sm:$0xff] %vm888_vm8, %v869_v6 }
 0x183   : > { %895 = vst.msk [vmem:[#allocation2 + $0x30] sm:$0xff] %vm888_vm8, %v853_v18 }
 0x185   : > { %v871_v19 = vpop.permute.xlu1 %870 }
 0x186   : > { %v855_v24 = vpop.permute.xlu0 %854  ;;  %904 = vst.msk [vmem:[#allocation2 + $0x78] sm:$0xff] %vm888_vm8, %v871_v19 }
 0x187   : > { %896 = vst.msk [vmem:[#allocation2 + $0x38] sm:$0xff] %vm888_vm8, %v855_v24 }
 0x189   : > { %v966_v22 = vpop.permute.xlu1 %965 }
 0x18a   : > { %v950_v23 = vpop.permute.xlu0 %949  ;;  %1000 = vst.msk [vmem:[#allocation2 + $0x70] sm:$0xff] %vm985_vm9, %v966_v22 }
 0x18b   : > { %992 = vst.msk [vmem:[#allocation2 + $0x30] sm:$0xff] %vm985_vm9, %v950_v23 }
 0x18d   : > { %v968_v26 = vpop.permute.xlu1 %967 }
 0x18e   : > { %v952_v25 = vpop.permute.xlu0 %951  ;;  %1001 = vst.msk [vmem:[#allocation2 + $0x78] sm:$0xff] %vm985_vm9, %v968_v26 }
 0x18f   : > { %993 = vst.msk [vmem:[#allocation2 + $0x38] sm:$0xff] %vm985_vm9, %v952_v25 }
 0x191   : > { %v1016_v28 = vld [vmem:[#allocation2 + $0x70] sm:$0xff] }
 0x192   : > { %v1008_v27 = vld [vmem:[#allocation2 + $0x30] sm:$0xff]  ;;  %1586 = vmatprep.mubr.msk.f32.mxu1 %vm1029_vm10, %v1016_v28 }
 0x193   : > { %1574 = vmatprep.mubr.msk.f32.mxu0 %vm1029_vm10, %v1008_v27 }
 0x195   : > { %v1017_v31 = vld [vmem:[#allocation2 + $0x78] sm:$0xff] }
 0x196   : > { %v1009_v29 = vld [vmem:[#allocation2 + $0x38] sm:$0xff]  ;;  %1587 = vmatmul.mubr.msk.f32.gmra.mrb[6].mxu1 %vm1029_vm10, %v1017_v31 }
 0x197   : > { %1575 = vmatmul.mubr.msk.f32.gmra.mrb[6].mxu0 %vm1029_vm10, %v1009_v29 }
 0x1d1   : > { %v1567_v33 = vpop.f32.mrb[0].mxu0 }
 0x1d2   : > { %v1579_v34 = vpop.f32.mrb[0].mxu1  ;;  %v1154_v35 = vadd.f32 %v1567_v33, %v2356_v32  ;;  %v1148_v37 = vpop.f32.mrb[1].mxu0 }
 0x1d3   : > { %v1194_v36 = vadd.f32 %v1579_v34, %v2356_v32  ;;  %v1188_v38 = vpop.f32.mrb[1].mxu1  ;;  %v1149_v39 = vadd.f32 %v2356_v32, %v1148_v37 }
 0x1d4   : > { %v1189_v40 = vadd.f32 %v2356_v32, %v1188_v38  ;;  %vm1228_vm11 = vcmp.ge.f32.partialorder %v1154_v35, 0.0  ;;  %v1248_v41 = vmul.f32 %v2363_v30, %v1154_v35 }
 0x1d5   : > { %vm1236_vm12 = vcmp.ge.f32.partialorder %v1194_v36, 0.0  ;;  %v1256_v42 = vmul.f32 %v2363_v30, %v1194_v36  ;;  %vm1227_vm13 = vcmp.ge.f32.partialorder %v1149_v39, 0.0  ;;  %v1247_v43 = vmul.f32 %v2363_v30, %v1149_v39 }
 0x1d6   : > { %vm1235_vm14 = vcmp.ge.f32.partialorder %v1189_v40, 0.0  ;;  %v1255_v44 = vmul.f32 %v2363_v30, %v1189_v40  ;;  %v1264_v45 = vsel %vm1228_vm11, %v1154_v35, %v1248_v41 }
 0x1d7   : > { %v1272_v46 = vsel %vm1236_vm12, %v1194_v36, %v1256_v42  ;;  %1280 = vst [vmem:[%s2373_s8 + $0x8] sm:$0xff] %v1264_v45  ;;  %v1263_v47 = vsel %vm1227_vm13, %v1149_v39, %v1247_v43 }
 0x1d8   : > { %1288 = vst [vmem:[%s2373_s8 + $0x48] sm:$0xff] %v1272_v46  ;;  %v1271_v21 = vsel %vm1235_vm14, %v1189_v40, %v1255_v44  ;;  %1279 = vst [vmem:[%s2373_s8] sm:$0xff] %v1263_v47 }
 0x1d9   : > { %1287 = vst [vmem:[%s2373_s8 + $0x40] sm:$0xff] %v1271_v21 }
 0x211   : > { %v1570_v48 = vpop.f32.mrb[2].mxu0 }
 0x212   : > { %v1582_v49 = vpop.f32.mrb[2].mxu1  ;;  %v1164_v50 = vadd.f32 %v1570_v48, %v2356_v32  ;;  %v1158_v52 = vpop.f32.mrb[3].mxu0 }
 0x213   : > { %v1204_v51 = vadd.f32 %v1582_v49, %v2356_v32  ;;  %v1198_v53 = vpop.f32.mrb[3].mxu1  ;;  %v1159_v54 = vadd.f32 %v2356_v32, %v1158_v52 }
 0x214   : > { %v1199_v55 = vadd.f32 %v2356_v32, %v1198_v53  ;;  %vm1230_vm15 = vcmp.ge.f32.partialorder %v1164_v50, 0.0  ;;  %v1250_v3 = vmul.f32 %v2363_v30, %v1164_v50 }
 0x215   : > { %vm1238_vm0 = vcmp.ge.f32.partialorder %v1204_v51, 0.0  ;;  %v1258_v20 = vmul.f32 %v2363_v30, %v1204_v51  ;;  %vm1229_vm1 = vcmp.ge.f32.partialorder %v1159_v54, 0.0  ;;  %v1249_v56 = vmul.f32 %v2363_v30, %v1159_v54 }
 0x216   : > { %vm1237_vm2 = vcmp.ge.f32.partialorder %v1199_v55, 0.0  ;;  %v1257_v57 = vmul.f32 %v2363_v30, %v1199_v55  ;;  %v1266_v58 = vsel %vm1230_vm15, %v1164_v50, %v1250_v3 }
 0x217   : > { %v1274_v59 = vsel %vm1238_vm0, %v1204_v51, %v1258_v20  ;;  %1282 = vst [vmem:[%s2373_s8 + $0x18] sm:$0xff] %v1266_v58  ;;  %v1265_v60 = vsel %vm1229_vm1, %v1159_v54, %v1249_v56 }
 0x218   : > { %1290 = vst [vmem:[%s2373_s8 + $0x58] sm:$0xff] %v1274_v59  ;;  %v1273_v61 = vsel %vm1237_vm2, %v1199_v55, %v1257_v57  ;;  %1281 = vst [vmem:[%s2373_s8 + $0x10] sm:$0xff] %v1265_v60 }
 0x219   : > { %1289 = vst [vmem:[%s2373_s8 + $0x50] sm:$0xff] %v1273_v61 }
 0x24d   : > { %v1585_v63 = vpop.f32.mrb[4].mxu1 }
 0x24e   : > { %v1573_v62 = vpop.f32.mrb[4].mxu0  ;;  %v1214_v1 = vadd.f32 %v1585_v63, %v2356_v32  ;;  %v1208_v8 = vpop.f32.mrb[5].mxu1 }
 0x24f   : > { %v1174_v0 = vadd.f32 %v1573_v62, %v2356_v32  ;;  %v1168_v2 = vpop.f32.mrb[5].mxu0  ;;  %v1209_v7 = vadd.f32 %v2356_v32, %v1208_v8 }
 0x250   : > { %v1169_v5 = vadd.f32 %v2356_v32, %v1168_v2  ;;  %vm1240_vm4 = vcmp.ge.f32.partialorder %v1214_v1, 0.0  ;;  %v1260_v10 = vmul.f32 %v2363_v30, %v1214_v1 }
 0x251   : > { %vm1232_vm3 = vcmp.ge.f32.partialorder %v1174_v0, 0.0  ;;  %v1252_v9 = vmul.f32 %v2363_v30, %v1174_v0  ;;  %vm1239_vm6 = vcmp.ge.f32.partialorder %v1209_v7, 0.0  ;;  %v1259_v12 = vmul.f32 %v2363_v30, %v1209_v7 }
 0x252   : > { %vm1231_vm5 = vcmp.ge.f32.partialorder %v1169_v5, 0.0  ;;  %v1251_v11 = vmul.f32 %v2363_v30, %v1169_v5  ;;  %v1276_v13 = vsel %vm1240_vm4, %v1214_v1, %v1260_v10 }
 0x253   : > { %v1268_v14 = vsel %vm1232_vm3, %v1174_v0, %v1252_v9  ;;  %1292 = vst [vmem:[%s2373_s8 + $0x68] sm:$0xff] %v1276_v13  ;;  %v1275_v4 = vsel %vm1239_vm6, %v1209_v7, %v1259_v12 }
 0x254   : > { %1284 = vst [vmem:[%s2373_s8 + $0x28] sm:$0xff] %v1268_v14  ;;  %v1267_v15 = vsel %vm1231_vm5, %v1169_v5, %v1251_v11  ;;  %1291 = vst [vmem:[%s2373_s8 + $0x60] sm:$0xff] %v1275_v4 }
 0x255   : > { %1283 = vst [vmem:[%s2373_s8 + $0x20] sm:$0xff] %v1267_v15 }
 0x269   : > { %v1588_v17 = vpop.f32.mrb[6].mxu1 }
 0x26a   : > { %v1576_v16 = vpop.f32.mrb[6].mxu0  ;;  %v1224_v18 = vadd.f32 %v1588_v17, %v2356_v32  ;;  %v1218_v24 = vpop.f32.mrb[7].mxu1 }
 0x26b   : > { %v1184_v6 = vadd.f32 %v1576_v16, %v2356_v32  ;;  %v1178_v19 = vpop.f32.mrb[7].mxu0  ;;  %v1219_v23 = vadd.f32 %v2356_v32, %v1218_v24 }
 0x26c   : > { %v1179_v22 = vadd.f32 %v2356_v32, %v1178_v19  ;;  %vm1242_vm8 = vcmp.ge.f32.partialorder %v1224_v18, 0.0  ;;  %v1262_v25 = vmul.f32 %v2363_v30, %v1224_v18 }
 0x26d   : > { %vm1234_vm7 = vcmp.ge.f32.partialorder %v1184_v6, 0.0  ;;  %v1254_v26 = vmul.f32 %v2363_v30, %v1184_v6  ;;  %vm1241_vm10 = vcmp.ge.f32.partialorder %v1219_v23, 0.0  ;;  %v1261_v28 = vmul.f32 %v2363_v30, %v1219_v23 }
 0x26e   : > { %vm1233_vm9 = vcmp.ge.f32.partialorder %v1179_v22, 0.0  ;;  %v1253_v27 = vmul.f32 %v2363_v30, %v1179_v22  ;;  %v1278_v31 = vsel %vm1242_vm8, %v1224_v18, %v1262_v25 }
 0x26f   : > { %v1270_v29 = vsel %vm1234_vm7, %v1184_v6, %v1254_v26  ;;  %1294 = vst [vmem:[%s2373_s8 + $0x78] sm:$0xff] %v1278_v31  ;;  %v1277_v33 = vsel %vm1241_vm10, %v1219_v23, %v1261_v28 }
 0x270   : > { %1286 = vst [vmem:[%s2373_s8 + $0x38] sm:$0xff] %v1270_v29  ;;  %v1269_v32 = vsel %vm1233_vm9, %v1179_v22, %v1253_v27  ;;  %1293 = vst [vmem:[%s2373_s8 + $0x70] sm:$0xff] %v1277_v33 }
 0x271   : > { %1285 = vst [vmem:[%s2373_s8 + $0x30] sm:$0xff] %v1269_v32 }
 0x272   : > { %1697 = shalt.err (!%p1694_p6)
}
 0x273   : > { %s1698_s10 = scalar_lea.hbm %s2417_s7, 2048  ;;  %s1702_s4 = scalar_lea.hbm %s2483_s3, 8192 }
 0x274   : > { %p1699_p7 = scmp.ne.s32.totalorder %s2417_s7, %s1698_s10  ;;  %p1703_p11 = scmp.lt.u32.totalorder %s2417_s7, %s2483_s3 }
 0x275   : > { %p1704_p12 = scmp.lt.u32.totalorder %s1702_s4, %s1698_s10  ;;  %p1706_p0 = scmp.lt.u32.totalorder %s1698_s10, %s2417_s7 }
 0x276   : > { %p1700_p9 = pnand %p1699_p7, %p1861_p3 }
 0x277   : > { %p1705_p13 = por %p1704_p12, %p1703_p11 }
 0x278   : > { %p1701_p10 = pneg %p1700_p9 }
 0x279   : > { %p1707_p1 = por %p1706_p0, %p1705_p13 }
 0x27b   : > { %p1708_p2 = pnand %p1707_p1, %p1701_p10 }
 0x27d   : > { %1711 = shalt.err (!%p1708_p2)
}
 0x27e   : > { %s1789_s15 = smov 128  }
 0x27f   : > { %1604 = dma.vmem_to_hbm [thread:$0]  (%p1861_p3), %s2419_s6, 2048, %s2417_s7, %s2427_s11, %s1789_s15, %s1789_s15, %s1781_s20  }
 0x280 PF: > { %p1610_p4 = scmp.ge.s32.totalorder %s1778_s19, 2  ;;  %s1327_s16 = sand.u32 1, %s1750_s12  }
 0x281   : > { %s1328_s21 = scalar_lea.sflag [#allocation4], %s1327_s16 }
 0x282   : > { %p1607_p5 = pnand %p1610_p4, %p1870_p8 }
 0x284   : > { %1745 = dma.done.wait (!%p1607_p5), %s1328_s21, 2048  }
 0x285   : > { %1747 = vsyncadd (!%p1607_p5), %s1328_s21, 4294965248  ;;  %s16_s19 = sadd.s32 1, %s1778_s19   ;;  %s2489_s12 = smov %s1754_s13 }
 0x286   : > { %p13_p6 = scmp.ge.s32.totalorder %s16_s19, 6   ;;  %s2490_s13 = smov %s1758_s14 }
 0x287   : > { %s2491_s14 = smov %s1879_s30  ;;  %s2492_s15 = smov %s1770_s17 }
 0x288   : > { %s2493_s16 = smov %s1774_s18  ;;  %s2494_s17 = smov %s2497_s22 }
 0x289   : > { %s2495_s18 = smov %s2501_s23  ;;  %15 = sbr.rel (!%p13_p6) target bundleno = 5 (0x5), region = 70 }
 0x290   :  { %1333 = vsyncpa [#allocation4], 1 }
 0x291   :  { %1335 = vsyncpa [#allocation4 + $0x1], 1 }

</bundles_post_ra>
